<compile_context>
chip_gen: v5e
topology: v5e:2x2
jax: 0.10.0
libtpu: 0.0.40
codegen_flags: <defaults>
</compile_context>

<pallas_src>
import functools
import sys

import jax
import jax.numpy as jnp
from jax import lax
from jax.experimental import pallas as pl
from jax.experimental.pallas import tpu as pltpu

_EPS = sys.float_info.epsilon  # matches torch: norm + sys.float_info.epsilon


def _cx_kernel(x_ref, yn_ref, mux_ref, o_ref, *, h, m_total, tm, col_chunk,
               center, needs_mask, mxu_dtype, exp_dtype):
    """One (batch, row-stripe) step: this stripe's contribution to CX_b."""
    # ---- center + L2-normalize this row stripe of X (f32) ----
    x = x_ref[0].astype(jnp.float32)                          # (C, TM)
    if center:
        x = x - mux_ref[0].astype(jnp.float32)                # (1,TM)/(C,1) bcast
    inv_nx = 1.0 / (jnp.sqrt(jnp.sum(x * x, axis=0, keepdims=True)) + _EPS)
    xn = (x * inv_nx).astype(mxu_dtype)                       # (C, TM)

    # ---- cosine distance: transposed-LHS MXU contraction (no XLU transpose).
    # Contract dim 0 of (C, TM) with dim 0 of (C, M) -> (TM, M), f32 acc.
    cos = lax.dot_general(xn, yn_ref[0],
                          dimension_numbers=(((0,), (0,)), ((), ())),
                          preferred_element_type=jnp.float32)
    d = jnp.maximum(1.0 - cos, 0.0)                           # (TM, M)

    # Row-wise min over ALL columns (exact: only rows are tiled).
    d_min = jnp.min(d, axis=-1, keepdims=True)                # (TM, 1)

    # Fold 1/(d_min + 1e-3) and 1/h into one per-row scale, and use
    #   max_j A_ij = 1 / sum_j exp((d_min - d_ij) * s)
    # -> one multiply-add + exp per element; no per-element divide, no max_j.
    s = pl.reciprocal((d_min + 0.001) * h, approx=True)       # (TM, 1)
    dmin_s = d_min * s

    # Fused exp + row-sum, column-chunked: the (TM, M) exp tile is never
    # materialized; each chunk's exp dies into its partial sum.  Chunk slices
    # are static and 128-lane aligned.
    denom = jnp.zeros((tm, 1), jnp.float32)
    for c0 in range(0, m_total, col_chunk):
        dc = d[:, c0:c0 + col_chunk]
        e = jnp.exp((dmin_s - dc * s).astype(exp_dtype))      # arg <= 0 -> e <= 1
        denom = denom + jnp.sum(e.astype(jnp.float32), axis=-1, keepdims=True)

    a_max = 1.0 / denom                                       # exact: feeds -log(CX)

    if needs_mask:
        # Last row stripe may be padded with garbage rows; drop them.
        row = lax.broadcasted_iota(jnp.int32, (tm, 1), 0)
        valid = (pl.program_id(1) * tm + row) < m_total
        a_max = jnp.where(valid, a_max, 0.0)

    stripe = jnp.sum(a_max) * (1.0 / m_total)                 # stripe's share of mean_i
    o_ref[...] = jnp.broadcast_to(stripe, o_ref.shape).astype(o_ref.dtype)


def _vmem_budget_and_limit(vmem_limit_bytes):
    """(tile-selection budget, compiler vmem_limit_bytes) for this chip."""
    if vmem_limit_bytes is not None:
        return int(vmem_limit_bytes), int(vmem_limit_bytes)
    try:
        cap = int(pltpu.get_tpu_info().vmem_capacity_bytes)
        limit = min(cap * 3 // 4, 96 << 20)   # ~48 MiB on v7x, 96 MiB on v5e/v6e
        return limit, limit
    except Exception:
        return 32 << 20, 32 << 20             # conservative, safe on every gen


def _select_row_tile(m, c, mxu_bytes, budget):
    """Largest 128-aligned row stripe of the (M, M) matrix that fits VMEM."""
    if m <= 512:
        return m
    y_foot = 2 * c * m * mxu_bytes            # double-buffered normalized-Y input
    for tm in (1024, 512, 256, 128):
        if tm > m:
            continue
        need = (y_foot
                + 2 * c * tm * 4              # double-buffered X stripe (f32)
                + 2 * tm * m * 4              # d + MXU result staging
                + tm * 512 * 4                # exp chunk
                + (2 << 20))                  # out blocks / misc slack
        if need <= budget:
            return tm
    return 128


def _pick_col_chunk(m):
    for c in (512, 256, 128):
        if m % c == 0:
            return min(c, m)
    return m


def _auto_exp_dtype():
    """bf16 exp on bf16-EUP parts (v6e / v7x), f32 elsewhere (v5e and older)."""
    try:
        kind = jax.devices()[0].device_kind.lower()
    except Exception:
        return jnp.float32
    if "tpu" not in kind:
        return jnp.float32
    if any(v in kind for v in ("v2", "v3", "v4", "v5")):
        return jnp.float32
    return jnp.bfloat16


def contextual_loss_forward(X_features, Y_features, *, h=0.1, PONO=True,
                            feature_centering=True, row_tile=None,
                            mxu_dtype=jnp.float32, exp_dtype=None,
                            vmem_limit_bytes=None):
    """JAX/Pallas equivalent of ContextualLoss_forward.forward.

    X_features, Y_features: (N, C, H, W) arrays (NCHW, like PyTorch).
    mxu_dtype: MXU operand dtype (accumulation is always f32).  Default f32
        for parity with the torch reference; jnp.bfloat16 roughly doubles MXU
        throughput at ~1e-3 cosine error (comparable to the 1e-3 d_min eps).
    exp_dtype: dtype of the exp in the hot (TM, M) path; None -> bf16 on
        v6e/v7x (bf16 EUP), f32 on v5e / others.
    Returns a scalar loss.
    """
    N, C, H, W = X_features.shape
    assert Y_features.shape == (N, C, H, W)
    # TODO(synk): rand_pooling / adaptive_avg_pool2d path (feature_size > 64)
    # is not implemented; inputs must already satisfy H, W <= 64.
    assert H <= 64 and W <= 64, "pooling path not implemented"

    M = H * W
    X = X_features.reshape(N, C, M)                    # free reshape, no transpose
    Yf = Y_features.reshape(N, C, M).astype(jnp.float32)

    # Y statistics + normalization happen once, in the wrapper (single XLA
    # pass); the kernel receives an MXU-ready (C, M) operand per sample.
    if feature_centering:
        if PONO:
            mu = jnp.mean(Yf, axis=1, keepdims=True)   # (N, 1, M)
        else:
            mu = jnp.mean(Yf, axis=2, keepdims=True)   # (N, C, 1)
        Yc = Yf - mu
    else:
        mu = jnp.zeros((N, 1, 1), jnp.float32)         # dummy, never read
        Yc = Yf
    y_norm = jnp.sqrt(jnp.sum(Yc * Yc, axis=1, keepdims=True)) + _EPS
    Yn = (Yc / y_norm).astype(mxu_dtype)               # (N, C, M) MXU operand

    exp_dtype = _auto_exp_dtype() if exp_dtype is None else exp_dtype
    mxu_bytes = jnp.dtype(mxu_dtype).itemsize

    budget, vmem_limit = _vmem_budget_and_limit(vmem_limit_bytes)
    if row_tile is None:
        tm = _select_row_tile(M, C, mxu_bytes, budget)
    else:
        tm = int(row_tile)
        assert tm == M or tm % 128 == 0, "row_tile must be M or a multiple of 128"
    tm = min(tm, M)
    n_tiles = pl.cdiv(M, tm)
    needs_mask = (M % tm) != 0
    col_chunk = _pick_col_chunk(M)

    if feature_centering and PONO:
        # PONO mean varies over spatial positions -> each X stripe gets its slice.
        mux_spec = pl.BlockSpec((1, 1, tm), lambda b, t: (b, 0, t))
    else:
        mux_spec = pl.BlockSpec((1,) + mu.shape[1:], lambda b, t: (b, 0, 0))

    kernel = functools.partial(
        _cx_kernel, h=float(h), m_total=M, tm=tm, col_chunk=col_chunk,
        center=feature_centering, needs_mask=needs_mask,
        mxu_dtype=mxu_dtype, exp_dtype=exp_dtype)

    # Each stripe owns one (8, 128) output slot -> no accumulator RMW and both
    # grid axes are independent ("parallel"): v7x megacore can shard stripes
    # even when N == 1.
    out = pl.pallas_call(
        kernel,
        out_shape=jax.ShapeDtypeStruct((N, n_tiles, 8, 128), jnp.float32),
        grid=(N, n_tiles),
        in_specs=[
            pl.BlockSpec((1, C, tm), lambda b, t: (b, 0, t)),  # X row stripe
            pl.BlockSpec((1, C, M), lambda b, t: (b, 0, 0)),   # normalized Y (per b)
            mux_spec,                                          # centering mean for X
        ],
        out_specs=pl.BlockSpec((1, 1, 8, 128), lambda b, t: (b, t, 0, 0)),
        compiler_params=pltpu.CompilerParams(
            dimension_semantics=("parallel", "parallel"),
            vmem_limit_bytes=vmem_limit),
    )(X, Yn, mu)

    cx = jnp.sum(out[:, :, 0, 0], axis=1)       # per-sample CX, shape (N,)
    return jnp.mean(-jnp.log(cx))               # scalar loss


def _reference_loss(X_features, Y_features, *, h=0.1, PONO=True,
                    feature_centering=True):
    """Pure-JAX (f32) transcription of the PyTorch forward, for checking."""
    N, C, H, W = X_features.shape
    Xf = X_features.astype(jnp.float32)
    Yf = Y_features.astype(jnp.float32)
    if feature_centering:
        if PONO:
            mu = jnp.mean(Yf, axis=1, keepdims=True)
        else:
            mu = jnp.mean(Yf.reshape(N, C, -1), axis=-1).reshape(N, C, 1, 1)
        Xf = Xf - mu
        Yf = Yf - mu

    def normalize(f):
        n = jnp.sqrt(jnp.sum(f * f, axis=1, keepdims=True)) + _EPS
        return f / n

    Xn = normalize(Xf).reshape(N, C, -1)
    Yn = normalize(Yf).reshape(N, C, -1)
    d = 1.0 - jnp.einsum('ncm,nck->nmk', Xn, Yn)
    d_norm = d / (jnp.min(d, axis=-1, keepdims=True) + 0.001)
    w = jnp.exp((1.0 - d_norm) / h)
    A = w / jnp.sum(w, axis=-1, keepdims=True)
    CX = jnp.mean(jnp.max(A, axis=-1), axis=1)
    return jnp.mean(-jnp.log(CX))


if __name__ == "__main__":
    key = jax.random.PRNGKey(0)
    kx, ky = jax.random.split(key)
    # batch=2, channels=4, spatial=16x16 (feature_size <= 64 -> no pooling).
    X = jax.random.normal(kx, (2, 4, 16, 16), dtype=jnp.float32)
    Y = jax.random.normal(ky, (2, 4, 16, 16), dtype=jnp.float32)

    # row_tile=128 -> 2 row stripes per batch element (M = 256), exercising
    # the multi-stripe grid and the per-stripe output reduction.
    loss = contextual_loss_forward(X, Y, h=0.1, PONO=True,
                                   feature_centering=True, row_tile=128)
    loss = jax.block_until_ready(loss)
    assert loss.shape == () and bool(jnp.isfinite(loss))

    ref = jax.block_until_ready(
        _reference_loss(X, Y, h=0.1, PONO=True, feature_centering=True))
    assert abs(float(loss) - float(ref)) <= 2e-2 + 2e-2 * abs(float(ref)), (
        float(loss), float(ref))
    print("KERNEL_OK")
</pallas_src>

<mosaic_0001>
module attributes {stable_mosaic.version = 11 : i64} {
  func.func @_cx_kernel(%arg0: i32, %arg1: i32, %arg2: memref<1x4x128xf32, #tpu.memory_space<vmem>>, %arg3: memref<1x4x256xf32, #tpu.memory_space<vmem>>, %arg4: memref<1x1x128xf32, #tpu.memory_space<vmem>>, %arg5: memref<1x1x8x128xf32, #tpu.memory_space<vmem>>) attributes {dimension_semantics = [#tpu.dimension_semantics<parallel>, #tpu.dimension_semantics<parallel>], iteration_bounds = array<i64: 2, 2>, scalar_prefetch = 0 : i64, scratch_operands = 0 : i64, tpu.core_type = #tpu.core_type<tc>, window_params = [{transform_indices = @transform_0, window_bounds = array<i64: 1, 4, 128>}, {transform_indices = @transform_1, window_bounds = array<i64: 1, 4, 256>}, {transform_indices = @transform_2, window_bounds = array<i64: 1, 1, 128>}, {transform_indices = @transform_3, window_bounds = array<i64: 1, 1, 8, 128>}]} {
    %c0 = arith.constant 0 : index
    %c0_0 = arith.constant 0 : index
    %c0_1 = arith.constant 0 : index
    %0 = vector.load %arg2[%c0, %c0_0, %c0_1] : memref<1x4x128xf32, #tpu.memory_space<vmem>>, vector<1x4x128xf32>
    %1 = vector.shape_cast %0 : vector<1x4x128xf32> to vector<4x128xf32>
    %c0_2 = arith.constant 0 : index
    %c0_3 = arith.constant 0 : index
    %c0_4 = arith.constant 0 : index
    %2 = vector.load %arg4[%c0_2, %c0_3, %c0_4] : memref<1x1x128xf32, #tpu.memory_space<vmem>>, vector<1x1x128xf32>
    %3 = vector.shape_cast %2 : vector<1x1x128xf32> to vector<1x128xf32>
    %4 = vector.broadcast %3 : vector<1x128xf32> to vector<4x128xf32>
    %5 = arith.subf %1, %4 : vector<4x128xf32>
    %6 = arith.mulf %5, %5 : vector<4x128xf32>
    %cst = arith.constant dense<0.000000e+00> : vector<128xf32>
    %7 = vector.multi_reduction <add>, %6, %cst [0] : vector<4x128xf32> to vector<128xf32>
    %8 = vector.shape_cast %7 : vector<128xf32> to vector<1x128xf32>
    %9 = math.sqrt %8 : vector<1x128xf32>
    %cst_5 = arith.constant 2.22044605E-16 : f32
    %10 = vector.broadcast %cst_5 : f32 to vector<1x128xf32>
    %11 = arith.addf %9, %10 : vector<1x128xf32>
    %cst_6 = arith.constant 1.000000e+00 : f32
    %12 = vector.broadcast %cst_6 : f32 to vector<1x128xf32>
    %13 = arith.divf %12, %11 : vector<1x128xf32>
    %14 = vector.broadcast %13 : vector<1x128xf32> to vector<4x128xf32>
    %15 = arith.mulf %5, %14 : vector<4x128xf32>
    %c0_7 = arith.constant 0 : index
    %c0_8 = arith.constant 0 : index
    %c0_9 = arith.constant 0 : index
    %16 = vector.load %arg3[%c0_7, %c0_8, %c0_9] : memref<1x4x256xf32, #tpu.memory_space<vmem>>, vector<1x4x256xf32>
    %17 = vector.shape_cast %16 : vector<1x4x256xf32> to vector<4x256xf32>
    %cst_10 = arith.constant dense<0.000000e+00> : vector<128x256xf32>
    %18 = tpu.matmul %15, %17, %cst_10 {dimension_numbers = #tpu.dot_dimension_numbers<[0], [0], [1], [1], [0, 1, 1, 1], [], []>} : vector<4x128xf32>, vector<4x256xf32>, vector<128x256xf32> -> vector<128x256xf32>
    %cst_11 = arith.constant 1.000000e+00 : f32
    %19 = vector.broadcast %cst_11 : f32 to vector<128x256xf32>
    %20 = arith.subf %19, %18 : vector<128x256xf32>
    %cst_12 = arith.constant 0.000000e+00 : f32
    %21 = vector.broadcast %cst_12 : f32 to vector<128x256xf32>
    %22 = arith.maximumf %20, %21 : vector<128x256xf32>
    %cst_13 = arith.constant dense<0x7F800000> : vector<128xf32>
    %23 = vector.multi_reduction <minimumf>, %22, %cst_13 [1] : vector<128x256xf32> to vector<128xf32>
    %24 = vector.shape_cast %23 : vector<128xf32> to vector<128x1xf32>
    %cst_14 = arith.constant 1.000000e-03 : f32
    %25 = vector.broadcast %cst_14 : f32 to vector<128x1xf32>
    %26 = arith.addf %24, %25 : vector<128x1xf32>
    %cst_15 = arith.constant 1.000000e-01 : f32
    %27 = vector.broadcast %cst_15 : f32 to vector<128x1xf32>
    %28 = arith.mulf %26, %27 : vector<128x1xf32>
    %29 = tpu.reciprocal %28 {approx = true} : vector<128x1xf32> -> vector<128x1xf32>
    %30 = arith.mulf %24, %29 : vector<128x1xf32>
    %cst_16 = arith.constant 0.000000e+00 : f32
    %31 = vector.broadcast %cst_16 : f32 to vector<128x1xf32>
    %32 = vector.broadcast %29 : vector<128x1xf32> to vector<128x256xf32>
    %33 = arith.mulf %22, %32 : vector<128x256xf32>
    %34 = vector.broadcast %30 : vector<128x1xf32> to vector<128x256xf32>
    %35 = arith.subf %34, %33 : vector<128x256xf32>
    %36 = math.exp %35 : vector<128x256xf32>
    %cst_17 = arith.constant dense<0.000000e+00> : vector<128xf32>
    %37 = vector.multi_reduction <add>, %36, %cst_17 [1] : vector<128x256xf32> to vector<128xf32>
    %38 = vector.shape_cast %37 : vector<128xf32> to vector<128x1xf32>
    %39 = arith.addf %31, %38 : vector<128x1xf32>
    %cst_18 = arith.constant 1.000000e+00 : f32
    %40 = vector.broadcast %cst_18 : f32 to vector<128x1xf32>
    %41 = arith.divf %40, %39 : vector<128x1xf32>
    %42 = vector.shape_cast %41 : vector<128x1xf32> to vector<1x128x1xf32>
    %cst_19 = arith.constant dense<0.000000e+00> : vector<1xf32>
    %43 = vector.multi_reduction <add>, %42, %cst_19 [1, 2] : vector<1x128x1xf32> to vector<1xf32>
    %44 = vector.shape_cast %43 : vector<1xf32> to vector<1x1x1xf32>
    %45 = vector.extract %44[0, 0, 0] : f32 from vector<1x1x1xf32>
    %cst_20 = arith.constant 3.906250e-03 : f32
    %46 = arith.mulf %45, %cst_20 : f32
    %47 = vector.broadcast %46 : f32 to vector<1x1x8x128xf32>
    %c0_21 = arith.constant 0 : index
    %c0_22 = arith.constant 0 : index
    %c0_23 = arith.constant 0 : index
    %c0_24 = arith.constant 0 : index
    %48 = vector.load %arg5[%c0_21, %c0_22, %c0_23, %c0_24] : memref<1x1x8x128xf32, #tpu.memory_space<vmem>>, vector<1x1x8x128xf32>
    tpu.vector_store %arg5[%c0_21, %c0_22, %c0_23, %c0_24], %47 {strides = array<i32>} : memref<1x1x8x128xf32, #tpu.memory_space<vmem>>, vector<1x1x8x128xf32>,
    return
  }
  func.func @transform_0(%arg0: i32, %arg1: i32) -> (i32, i32, i32) {
    %c0_i32 = arith.constant 0 : i32
    %c0_i32_0 = arith.constant 0 : i32
    return %arg0, %c0_i32, %arg1 : i32, i32, i32
  }
  func.func @transform_1(%arg0: i32, %arg1: i32) -> (i32, i32, i32) {
    %c0_i32 = arith.constant 0 : i32
    %c0_i32_0 = arith.constant 0 : i32
    %c0_i32_1 = arith.constant 0 : i32
    return %arg0, %c0_i32, %c0_i32_0 : i32, i32, i32
  }
  func.func @transform_2(%arg0: i32, %arg1: i32) -> (i32, i32, i32) {
    %c0_i32 = arith.constant 0 : i32
    %c0_i32_0 = arith.constant 0 : i32
    return %arg0, %c0_i32, %arg1 : i32, i32, i32
  }
  func.func @transform_3(%arg0: i32, %arg1: i32) -> (i32, i32, i32, i32) {
    %c0_i32 = arith.constant 0 : i32
    %c0_i32_0 = arith.constant 0 : i32
    %c0_i32_1 = arith.constant 0 : i32
    return %arg0, %arg1, %c0_i32, %c0_i32_0 : i32, i32, i32, i32
  }
}

</mosaic_0001>

<bundles_post_ra>
// kernel: tpu_custom_call.1
= control target key start
LH: loop header
LB: loop body
LE: loop exit
PB: predicated region body
PF: predicated region fallthrough
CT: control target
= control target key end

     0   :  { %s2590_s0 = inlined_call_operand.hbm [shape: f32[2,4,256], index: 0, kind: input, shape index: {}]   ;;  %s2591_s1 = inlined_call_operand.hbm [shape: f32[2,4,256], index: 1, kind: input, shape index: {}]   ;;  %s2592_s2 = inlined_call_operand.hbm [shape: f32[2,1,256], index: 2, kind: input, shape index: {}]   ;;  %s2593_s3 = inlined_call_operand.hbm [shape: f32[2,2,8,128], index: 3, kind: output, shape index: {}]  }
   0x1   :  { %2603 = sst [smem:[#allocation21_spill]] %s2591_s1 }
   0x2   :  { %2604 = sst [smem:[#allocation22_spill]] %s2593_s3 }
   0x3   :  { %8 = vsyncpa [#allocation3], 0 }
   0x4   :  { %10 = vsyncpa [#allocation3 + $0x1], 0 }
   0x5   :  { %11 = vsyncpa [#allocation6], 0 }
   0x6   :  { %13 = vsyncpa [#allocation6 + $0x1], 0 }
   0x7   :  { %14 = vsyncpa [#allocation4], 0 }
   0x8   :  { %16 = vsyncpa [#allocation4 + $0x1], 0  ;;  %s1889_s12 = smov 0   ;;  %s1891_s13 = smov 0  }
   0x9   :  { %s1893_s14 = smov 0   ;;  %s1895_s15 = smov 0  }
   0xa   :  { %s1897_s16 = smov 0   ;;  %s1899_s17 = smov 0  }
   0xb   :  { %s1901_s18 = smov 0   ;;  %s1903_s19 = smov 0  }
   0xc   :  { %s1905_s20 = smov 0   ;;  %s1907_s21 = smov 0  }
   0xd   :  { %s1909_s22 = smov 0  }
   0xe LB: > { %2605 = sst [smem:[#allocation13_spill]] %s1839_s15  ;;  %s1943_s23 = sadd.s32 4294967295, %s1867_s22   ;;  %s1867_s22 = sphi %s1909_s22, %s22_s22   ;;  %s1863_s21 = sphi %s1907_s21, %s2671_s21   ;;  %s1859_s20 = sphi %s1905_s20, %s2670_s20   ;;  %s1855_s19 = sphi %s1903_s19, %s2669_s19   ;;  %s1851_s18 = sphi %s1901_s18, %s2668_s18   ;;  %s1847_s17 = sphi %s1899_s17, %s2667_s17   ;;  %s1843_s16 = sphi %s1897_s16, %s2666_s16   ;;  %s1839_s15 = sphi %s1895_s15, %s2665_s15   ;;  %s1835_s14 = sphi %s1893_s14, %s2664_s14   ;;  %s1831_s13 = sphi %s1891_s13, %s2663_s13   ;;  %s1827_s12 = sphi %s1889_s12, %s2662_s12  }
   0xf   : > { %2606 = sst [smem:[#allocation14_spill]] %s1851_s18  ;;  %s34_s24 = sadd.s32 1, %s1863_s21 }
  0x10   : > { %2607 = sst [smem:[#allocation15_spill]] %s1855_s19  ;;  %p51_p0 = scmp.eq.s32.totalorder %s1867_s22, 0 }
  0x11   : > { %p57_p1 = scmp.eq.s32.totalorder %s1943_s23, 0  ;;  %p76_p2 = scmp.ne.s32.totalorder %s1835_s14, %s1831_s13 }
  0x12   : > { %p82_p3 = scmp.ne.s32.totalorder %s1831_s13, %s1827_s12  ;;  %p1423_p5 = scmp.lt.s32.totalorder %s1867_s22, 4 }
  0x13   : > { %p1954_p4 = por %p76_p2, %p51_p0  ;;  %s183_s28 = sand.u32 1, %s1867_s22  }
  0x14   : > { %p1961_p6 = por %p82_p3, %p57_p1  ;;  %s185_s29 = sand.u32 1, %s1835_s14  }
  0x15   : > { %s1349_s30 = sshll.u32 %s185_s29, 3  ;;  %s1396_s4 = sshll.u32 %s1863_s21, 3 }
  0x16   : > { %s2609_s27 = scalar_select %p1961_p6, 1, 0 }
  0x17   : > { %s2611_s1 = sld [smem:[#allocation21_spill]]  ;;  %s187_s9 = scalar_lea.vmem [#allocation5], %s1349_s30 }
  0x18   : > { %2610 = sst [smem:[#allocation16_spill]] %s2609_s27  ;;  %s196_s10 = sshll.u32 %s187_s9, 4  ;;  %s197_s10 = int_to_ptr.vmem [resolvable:$true] %s196_s10 }
  0x19   : > { %p1413_p7 = pnand %p1423_p5, %p1954_p4  ;;  %p1353_p8 = scmp.ge.s32.totalorder %s1867_s22, 1 }
  0x1a   : > { %p220_p9 = scmp.lt.s32.totalorder %s1867_s22, 5  ;;  %s1977_s11 = scalar_lea.sflag [#allocation6], %s183_s28 }
  0x1b   : > { %s1343_s29 = sadd.s32 4294967294, %s1867_s22   ;;  %s31_s30 = sadd.s32 1, %s1859_s20 }
  0x1c   : > { %p1980_p10 = pnand %p1353_p8, %p220_p9  ;;  %p32_p11 = scmp.ge.s32.totalorder %s31_s30, 2 }
  0x1d   : > { %s192_s7 = scalar_lea.hbm %s2611_s1, %s1396_s4  ;;  %s43_s4 = sadd.s32 1, %s1847_s17 }
  0x1e   : > { %s194_s8 = sshll.u32 %s192_s7, 4  ;;  %p50_p12 = scmp.ne.s32.totalorder %s1847_s17, %s1843_s16  ;;  %s195_s8 = int_to_ptr.hbm [resolvable:$true] %s194_s8 }
  0x1f   : > { %1415 = dma.hbm_to_vmem [thread:$0]  (!%p1413_p7), %s195_s8, 128, %s197_s10, %s1977_s11  }
  0x20   : > { %p56_p13 = scmp.ne.s32.totalorder %s1843_s16, %s1839_s15  ;;  %p136_p2 = scmp.eq.s32.totalorder %s1943_s23, 3 }
  0x21   : > { %s2673_s30 = smov (%p32_p11, %s31_s30), 0  ;;  %s2675_s24 = smov (!%p32_p11, %s34_s24), %s1863_s21 }
  0x22   : > { %2613 = sst [smem:[#allocation17_spill]] %s2673_s30  ;;  %s39_s26 = ssub.s32 %s1859_s20, %s2673_s30 }
  0x23   : > { %p2001_p3 = por %p51_p0, %p50_p12  ;;  %p36_p4 = scmp.ge.s32.totalorder %s2675_s24, 2 }
  0x24   : > { %p2007_p7 = por %p57_p1, %p56_p13  ;;  %p2011_p8 = por %p136_p2, %p50_p12 }
  0x25   : > { %p142_p9 = scmp.eq.s32.totalorder %s1343_s29, 3  ;;  %s2677_s24 = smov (%p36_p4, %s2675_s24), 0 }
  0x26   : > { %s2616_s6 = scalar_select %p2011_p8, 1, 0 }
  0x27   : > { %2618 = sst [smem:[#allocation19_spill]] %s2677_s24  ;;  %p2017_p11 = por %p142_p9, %p56_p13 }
  0x28   : > { %2617 = sst [smem:[#allocation18_spill]] %s2616_s6  ;;  %s162_s8 = sand.u32 1, %s1847_s17  }
  0x29   : > { %s2619_s7 = scalar_select %p2017_p11, 1, 0 }
  0x2a   : > { %s38_s9 = ssub.s32 %s1863_s21, %s2677_s24  ;;  %s1346_s25 = sshll.u32 %s162_s8, 2 }
  0x2b   : > { %2620 = sst [smem:[#allocation20_spill]] %s2619_s7  ;;  %s40_s10 = sor.u32 %s39_s26, %s38_s9 }
  0x2c   : > { %p67_p0 = scmp.eq.s32.totalorder %s38_s9, 0  ;;  %p41_p1 = scmp.eq.s32.totalorder %s40_s10, 0 }
  0x2d   : > { %s2621_s1 = sadd.s32 1, %s1835_s14  ;;  %s1347_s29 = sshll.u32 %s1863_s21, 1 }
  0x2e   : > { %s2027_s30 = scalar_select %p67_p0, %s1835_s14, %s2621_s1  }
  0x2f   : > { %s2030_s15 = scalar_select %p41_p1, %s1847_s17, %s43_s4  }
  0x30   : > { %s170_s6 = sadd.s32 %s1859_s20, %s1347_s29  ;;  %s166_s3 = scalar_lea.vmem [#allocation2], %s1346_s25 }
  0x31   : > { %s176_s18 = sshll.u32 %s166_s3, 4  ;;  %s1348_s19 = sshll.u32 %s170_s6, 2  ;;  %s177_s18 = int_to_ptr.vmem [resolvable:$true] %s176_s18 }
  0x32   : > { %s172_s24 = scalar_lea.hbm %s2590_s0, %s1348_s19  ;;  %p1410_p12 = pnand %p1423_p5, %p2001_p3 }
  0x33   : > { %s174_s26 = sshll.u32 %s172_s24, 4  ;;  %s163_s1 = scalar_lea.sflag [#allocation3], %s162_s8  ;;  %s175_s26 = int_to_ptr.hbm [resolvable:$true] %s174_s26 }
  0x34   : > { %1412 = dma.hbm_to_vmem [thread:$0]  (!%p1410_p12), %s175_s26, 64, %s177_s18, %s163_s1  }
  0x35   : > { %s211_s10 = scalar_lea.hbm %s2592_s2, %s170_s6  ;;  %s206_s25 = scalar_lea.vmem [#allocation7], %s162_s8 }
  0x36   : > { %s215_s29 = sshll.u32 %s206_s25, 4  ;;  %s213_s3 = sshll.u32 %s211_s10, 4  ;;  %s216_s29 = int_to_ptr.vmem [resolvable:$true] %s215_s29  ;;  %s214_s3 = int_to_ptr.hbm [resolvable:$true] %s213_s3 }
  0x37   : > { %1418 = dma.hbm_to_vmem [thread:$0]  (!%p1410_p12), %s214_s3, 16, %s216_s29, %s1977_s11  }
  0x38   : > { %224 = sbr.rel (%p1980_p10) target bundleno = 1015 (0x3f7), region = 32  ;;  %s2048_s19 = sand.u32 (!%p1980_p10), 1, %s1843_s16  }
  0x39   : > { %s1354_s18 = sshll.u32 (!%p1980_p10), %s2048_s19, 2  ;;  %s227_s24 = scalar_lea.sflag (!%p1980_p10), [#allocation3], %s2048_s19 }
  0x3a   : > { %s230_s27 = scalar_lea.vmem (!%p1980_p10), [#allocation2], %s1354_s18 }
  0x3d   : > { %1810 = dma.done.wait (%p2007_p7), %s227_s24, 64  }
  0x3e   : > { %1812 = vsyncadd (%p2007_p7), %s227_s24, 4294967232  ;;  %s236_s28 = sand.u32 1, %s1943_s23   ;;  %s238_s12 = sand.u32 1, %s1831_s13  }
  0x3f   : > { %s1355_s6 = sshll.u32 %s238_s12, 3  ;;  %s237_s7 = scalar_lea.sflag [#allocation6], %s236_s28 }
  0x40   : > { %s240_s8 = scalar_lea.vmem [#allocation5], %s1355_s6 }
  0x41   : > { %1814 = dma.done.wait (%p1961_p6), %s237_s7, 128  }
  0x42   : > { %1816 = vsyncadd (%p1961_p6), %s237_s7, 4294967168  ;;  %s249_s26 = scalar_lea.vmem [#allocation7], %s2048_s19 }
  0x43   : > { %1818 = dma.done.wait (%p2007_p7), %s237_s7, 16  }
  0x44   : > { %1820 = vsyncadd (%p2007_p7), %s237_s7, 4294967280  ;;  %v326_v0 = vld [vmem:[%s240_s8] sm:$0xff]  ;;  %v282_v1 = vld [vmem:[%s230_s27] sm:$0xf]  ;;  %vm289_vm0 = vcmask 1043456   ;;  %vm363_vm7 = vcmask 31744  }
  0x45   : > { %360 = vst [vmem:[#allocation1] ss:$2 sm:$0xff] %v326_v0  ;;  %v1514_v2 = vld [vmem:[%s249_s26] ss:$0 sm:$0xff]  ;;  %vm1154_vm9 = vcmask 7168   ;;  %s2653_s23 = sld [smem:[#allocation15_spill]] }
  0x46   : > { %v287_v3 = vsub.f32 %v282_v1, %v1514_v2  ;;  %s2654_s5 = sld [smem:[#allocation14_spill]]  ;;  %s1356_s9 = sshll.u32 %s2048_s19, 3 }
  0x47   : > { %s2655_s3 = sld [smem:[#allocation22_spill]]  ;;  %s281_s27 = scalar_lea.vmem [#allocation8], %s1356_s9 }
  0x48   : > { %v288_v4 = vmul.f32 %v287_v3, %v287_v3  ;;  %s1213_s11 = sshll.u32 %s281_s27, 4  ;;  %s1199_s7 = scalar_lea.sflag [#allocation4], %s2048_s19  ;;  %s1214_s11 = int_to_ptr.vmem [resolvable:$true] %s1213_s11 }
  0x4a   : > { %v290_v5 = vsel %vm289_vm0, %v288_v4, 0.0 }
  0x4b   : > { %v291_v6 = vrot.slane %v290_v5, 4  ;;  %s1392_s1 = sshll.u32 %s2653_s23, 1 }
  0x4c   : > { %v361_v15 = vld.sshfl [vmem:[#allocation1] sm:$0xff pattern:$0x75316420]  ;;  %v362_v16 = vld.sshfl [vmem:[#allocation1 + $0x8] sm:$0xff pattern:$0x75316420]  ;;  %s1209_s4 = sadd.s32 %s2654_s5, %s1392_s1 }
  0x4d   : > { %v292_v7 = vadd.f32 %v291_v6, %v290_v5  ;;  %1357 = vmatpush.msk.msra.mxu0 %vm289_vm0, %v361_v15  ;;  %1374 = vmatpush.msk.msra.mxu1 %vm289_vm0, %v362_v16  ;;  %s1393_s10 = sshll.u32 %s1209_s4, 3  ;;  %s1757_s1 = scalar_lea.hbm %s2655_s3, 32 }
  0x4e   : > { %1397 = vmatpush.msk.msra.mxu2 %vm289_vm0, %v361_v15  ;;  %1398 = vmatpush.msk.msra.mxu3 %vm289_vm0, %v362_v16  ;;  %s1211_s24 = scalar_lea.hbm %s2655_s3, %s1393_s10 }
  0x4f   : > { %v293_v8 = vrot.slane %v292_v7, 2  ;;  %s1215_s28 = sshll.u32 %s1211_s24, 4  ;;  %s1216_s28 = int_to_ptr.hbm [resolvable:$true] %s1215_s28 }
  0x50   : > { %s1751_s8 = sshra.s32 %s1216_s28, 4  ;;  %s1752_s8 = int_to_ptr.hbm [resolvable:$true] %s1751_s8 }
  0x51   : > { %v294_v9 = vadd.f32 %v293_v8, %v292_v7  ;;  %s1753_s26 = scalar_lea.hbm %s1752_s8, 8  ;;  %p1758_p13 = scmp.lt.s32.totalorder %s1752_s8, %s2655_s3 }
  0x52   : > { %p1754_p5 = scmp.ne.s32.totalorder %s1752_s8, %s1753_s26  ;;  %p1759_p2 = scmp.lt.s32.totalorder %s1757_s1, %s1753_s26 }
  0x53   : > { %v295_v10 = vrot.slane %v294_v9, 1 }
  0x54   : > { %p1755_p6 = pnand %p1754_p5, %p2011_p8  ;;  %p1760_p3 = por %p1759_p2, %p1758_p13 }
  0x55   : > { %v296_v11 = vadd.f32 %v295_v10, %v294_v9 }
  0x56   : > { %p1756_p10 = pneg %p1755_p6 }
  0x57   : > { %1515 = vrsqrt.f32 %v296_v11  ;;  %vm304_vm1 = vcmp.eq.f32.partialorder %v296_v11, inf  ;;  %v307_v20 = vand.u32 2147483648, %v296_v11  ;;  %vm306_vm2 = vcmp.eq.f32.partialorder %v296_v11, 0.0 }
  0x58   : > { %p1761_p4 = pnand %p1760_p3, %p1756_p10 }
  0x5d   : > { %v1516_v12 = vpop.eup %1515 }
  0x5e   : > { %v298_v13 = vmul.f32 %v1516_v12, %v296_v11 }
  0x60   : > { %v299_v14 = vmul.f32 %v1516_v12, %v298_v13 }
  0x62   : > { %v300_v17 = vmul.f32 0.5, %v299_v14 }
  0x64   : > { %v301_v18 = vsub.f32 1.5, %v300_v17 }
  0x66   : > { %v302_v19 = vmul.f32 %v1516_v12, %v301_v18 }
  0x68   : > { %v303_v21 = vmul.f32 %v302_v19, %v296_v11 }
  0x6a   : > { %v305_v22 = vsel %vm304_vm1, %v296_v11, %v303_v21 }
  0x6b   : > { %v308_v23 = vsel %vm306_vm2, %v307_v20, %v305_v22 }
  0x6c   : > { %v309_v24 = vadd.f32 2.220446e-16, %v308_v23 }
  0x6e   : > { %1517 = vrcp.f32 %v309_v24  ;;  %v321_v27 = vand.u32 2147483648, %v309_v24  ;;  %vm315_vm3 = vweird.f32 %v309_v24  ;;  %v319_v29 = vand.u32 2147483647, %v309_v24 }
  0x70   : > { %v322_v31 = vor.u32 1.1754944e-38, %v321_v27  ;;  %vm320_vm6 = vcmp.eq.f32.partialorder %v319_v29, 8.507059e+37 }
  0x74   : > { %v1518_v25 = vpop.eup %1517 }
  0x75   : > { %v311_v26 = vmul.f32 %v1518_v25, %v309_v24  ;;  %vm316_vm4 = vweird.f32 %v1518_v25 }
  0x76   : > { %vm317_vm5 = vmor %vm315_vm3, %vm316_vm4 }
  0x77   : > { %v312_v28 = vsub.f32 1.0, %v311_v26 }
  0x79   : > { %v313_v30 = vmul.f32 %v1518_v25, %v312_v28 }
  0x7b   : > { %v314_v32 = vadd.f32 %v1518_v25, %v313_v30 }
  0x7d   : > { %v318_v33 = vsel %vm317_vm5, %v1518_v25, %v314_v32 }
  0x7e   : > { %v323_v34 = vsel %vm320_vm6, %v322_v31, %v318_v33 }
  0x7f   : > { %v325_v35 = vmul.f32 %v323_v34, %v287_v3 }
  0x81   : > { %327 = vxpose.xlu0.b32.start.end [1/1] (short) %v325_v35, 128 }
 0x125   : > { %v343_v36 = vpop.trf.xlu0 }
 0x126   : > { %1358 = vmatmul.msk.f32.vlgmr.msra.gmra.mxu0 %vm363_vm7, %v343_v36  ;;  %1375 = vmatmul.msk.f32.vlgmr.msra.gmra.mxu1 %vm363_vm7, %v343_v36 }
 0x12d   : > { %v344_v37 = vpop.trf.xlu0 }
 0x12e   : > { %1359 = vmatmul.msk.f32.gmra.mxu0 %vm363_vm7, %v344_v37  ;;  %1376 = vmatmul.msk.f32.gmra.mxu1 %vm363_vm7, %v344_v37 }
 0x135   : > { %v345_v38 = vpop.trf.xlu0 }
 0x136   : > { %1360 = vmatmul.msk.f32.gmra.mxu0 %vm363_vm7, %v345_v38  ;;  %1377 = vmatmul.msk.f32.gmra.mxu1 %vm363_vm7, %v345_v38 }
 0x13d   : > { %v346_v39 = vpop.trf.xlu0 }
 0x13e   : > { %1361 = vmatmul.msk.f32.gmra.mxu0 %vm363_vm7, %v346_v39  ;;  %1378 = vmatmul.msk.f32.gmra.mxu1 %vm363_vm7, %v346_v39 }
 0x145   : > { %v347_v40 = vpop.trf.xlu0 }
 0x146   : > { %1362 = vmatmul.msk.f32.gmra.mxu0 %vm363_vm7, %v347_v40  ;;  %1379 = vmatmul.msk.f32.gmra.mxu1 %vm363_vm7, %v347_v40 }
 0x14d   : > { %v348_v41 = vpop.trf.xlu0 }
 0x14e   : > { %1363 = vmatmul.msk.f32.gmra.mxu0 %vm363_vm7, %v348_v41  ;;  %1380 = vmatmul.msk.f32.gmra.mxu1 %vm363_vm7, %v348_v41 }
 0x155   : > { %v349_v42 = vpop.trf.xlu0 }
 0x156   : > { %1364 = vmatmul.msk.f32.gmra.mxu0 %vm363_vm7, %v349_v42  ;;  %1381 = vmatmul.msk.f32.gmra.mxu1 %vm363_vm7, %v349_v42 }
 0x15d   : > { %v350_v43 = vpop.trf.xlu0 }
 0x15e   : > { %1365 = vmatmul.msk.f32.gmra.mxu0 %vm363_vm7, %v350_v43  ;;  %1382 = vmatmul.msk.f32.gmra.mxu1 %vm363_vm7, %v350_v43 }
 0x165   : > { %v351_v44 = vpop.trf.xlu0 }
 0x166   : > { %1366 = vmatmul.msk.f32.vlgmr.msra.gmra.mxu2 %vm363_vm7, %v351_v44  ;;  %1383 = vmatmul.msk.f32.vlgmr.msra.gmra.mxu3 %vm363_vm7, %v351_v44 }
 0x16d   : > { %v352_v45 = vpop.trf.xlu0 }
 0x16e   : > { %1367 = vmatmul.msk.f32.gmra.mxu2 %vm363_vm7, %v352_v45  ;;  %1384 = vmatmul.msk.f32.gmra.mxu3 %vm363_vm7, %v352_v45 }
 0x175   : > { %v353_v46 = vpop.trf.xlu0 }
 0x176   : > { %1368 = vmatmul.msk.f32.gmra.mxu2 %vm363_vm7, %v353_v46  ;;  %1385 = vmatmul.msk.f32.gmra.mxu3 %vm363_vm7, %v353_v46 }
 0x17d   : > { %v354_v47 = vpop.trf.xlu0 }
 0x17e   : > { %1369 = vmatmul.msk.f32.gmra.mxu2 %vm363_vm7, %v354_v47  ;;  %1386 = vmatmul.msk.f32.gmra.mxu3 %vm363_vm7, %v354_v47 }
 0x185   : > { %v355_v48 = vpop.trf.xlu0 }
 0x186   : > { %1370 = vmatmul.msk.f32.gmra.mxu2 %vm363_vm7, %v355_v48  ;;  %1387 = vmatmul.msk.f32.gmra.mxu3 %vm363_vm7, %v355_v48 }
 0x18d   : > { %v356_v49 = vpop.trf.xlu0 }
 0x18e   : > { %1371 = vmatmul.msk.f32.gmra.mxu2 %vm363_vm7, %v356_v49  ;;  %1388 = vmatmul.msk.f32.gmra.mxu3 %vm363_vm7, %v356_v49 }
 0x195   : > { %v357_v50 = vpop.trf.xlu0 }
 0x196   : > { %1372 = vmatmul.msk.f32.gmra.mxu2 %vm363_vm7, %v357_v50  ;;  %1389 = vmatmul.msk.f32.gmra.mxu3 %vm363_vm7, %v357_v50 }
 0x19d   : > { %v358_v51 = vpop.trf.xlu0 }
 0x19e   : > { %1373 = vmatmul.msk.f32.gmra.mxu2 %vm363_vm7, %v358_v51  ;;  %1390 = vmatmul.msk.f32.gmra.mxu3 %vm363_vm7, %v358_v51 }
 0x1a3   : > { %v433_v52 = vpop.f32.mrf.mxu0  ;;  %v498_v53 = vpop.f32.mrf.mxu1 }
 0x1a4   : > { %v546_v54 = vsub.f32 1.0, %v433_v52  ;;  %v547_v55 = vsub.f32 1.0, %v498_v53 }
 0x1a6   : > { %v2104_v56 = vmax.f32 %v546_v54, 0.0  ;;  %v2106_v57 = vmax.f32 %v547_v55, 0.0 }
 0x1a8   : > { %v610_v58 = vmin.f32 %v2104_v56, %v2106_v57 }
 0x1aa   : > { %611 = vmin.xlane.f32.xlu0 %v610_v58 }
 0x1ab   : > { %v436_v59 = vpop.f32.mrf.mxu0  ;;  %v501_v60 = vpop.f32.mrf.mxu1 }
 0x1ac   : > { %v548_v61 = vsub.f32 1.0, %v436_v59  ;;  %v549_v62 = vsub.f32 1.0, %v501_v60 }
 0x1ae   : > { %v2110_v63 = vmax.f32 %v548_v61, 0.0  ;;  %v2112_v0 = vmax.f32 %v549_v62, 0.0 }
 0x1b0   : > { %v613_v1 = vmin.f32 %v2110_v63, %v2112_v0 }
 0x1b2   : > { %614 = vmin.xlane.f32.xlu1 %v613_v1 }
 0x1b3   : > { %v439_v2 = vpop.f32.mrf.mxu0  ;;  %v504_v3 = vpop.f32.mrf.mxu1 }
 0x1b4   : > { %v550_v4 = vsub.f32 1.0, %v439_v2  ;;  %v551_v5 = vsub.f32 1.0, %v504_v3 }
 0x1b6   : > { %v2116_v6 = vmax.f32 %v550_v4, 0.0  ;;  %v2118_v7 = vmax.f32 %v551_v5, 0.0 }
 0x1b8   : > { %v616_v8 = vmin.f32 %v2116_v6, %v2118_v7 }
 0x1ba   : > { %617 = vmin.xlane.f32.xlu1 %v616_v8 }
 0x1bb   : > { %v442_v9 = vpop.f32.mrf.mxu0  ;;  %v507_v10 = vpop.f32.mrf.mxu1 }
 0x1bc   : > { %v552_v11 = vsub.f32 1.0, %v442_v9  ;;  %v553_v12 = vsub.f32 1.0, %v507_v10 }
 0x1be   : > { %v2122_v13 = vmax.f32 %v552_v11, 0.0  ;;  %v2124_v14 = vmax.f32 %v553_v12, 0.0 }
 0x1c0   : > { %v619_v15 = vmin.f32 %v2122_v13, %v2124_v14 }
 0x1c2   : > { %620 = vmin.xlane.f32.xlu2 %v619_v15 }
 0x1c3   : > { %v445_v16 = vpop.f32.mrf.mxu0  ;;  %v510_v17 = vpop.f32.mrf.mxu1 }
 0x1c4   : > { %v554_v18 = vsub.f32 1.0, %v445_v16  ;;  %v555_v19 = vsub.f32 1.0, %v510_v17 }
 0x1c6   : > { %v2128_v20 = vmax.f32 %v554_v18, 0.0  ;;  %v2130_v21 = vmax.f32 %v555_v19, 0.0 }
 0x1c8   : > { %v622_v22 = vmin.f32 %v2128_v20, %v2130_v21 }
 0x1ca   : > { %623 = vmin.xlane.f32.xlu2 %v622_v22 }
 0x1cb   : > { %v448_v23 = vpop.f32.mrf.mxu0  ;;  %v513_v24 = vpop.f32.mrf.mxu1 }
 0x1cc   : > { %v556_v25 = vsub.f32 1.0, %v448_v23  ;;  %v557_v26 = vsub.f32 1.0, %v513_v24 }
 0x1ce   : > { %v2134_v27 = vmax.f32 %v556_v25, 0.0  ;;  %v2136_v28 = vmax.f32 %v557_v26, 0.0 }
 0x1d0   : > { %v625_v29 = vmin.f32 %v2134_v27, %v2136_v28 }
 0x1d2   : > { %626 = vmin.xlane.f32.xlu1 %v625_v29 }
 0x1d3   : > { %v451_v30 = vpop.f32.mrf.mxu0  ;;  %v516_v31 = vpop.f32.mrf.mxu1 }
 0x1d4   : > { %v558_v32 = vsub.f32 1.0, %v451_v30  ;;  %v559_v33 = vsub.f32 1.0, %v516_v31 }
 0x1d6   : > { %v2140_v34 = vmax.f32 %v558_v32, 0.0  ;;  %v2142_v35 = vmax.f32 %v559_v33, 0.0 }
 0x1d8   : > { %v628_v36 = vmin.f32 %v2140_v34, %v2142_v35 }
 0x1da   : > { %629 = vmin.xlane.f32.xlu2 %v628_v36 }
 0x1db   : > { %v454_v37 = vpop.f32.mrf.mxu0  ;;  %v519_v38 = vpop.f32.mrf.mxu1 }
 0x1dc   : > { %v560_v39 = vsub.f32 1.0, %v454_v37  ;;  %v561_v40 = vsub.f32 1.0, %v519_v38 }
 0x1de   : > { %v2146_v41 = vmax.f32 %v560_v39, 0.0  ;;  %v2148_v42 = vmax.f32 %v561_v40, 0.0 }
 0x1e0   : > { %v631_v43 = vmin.f32 %v2146_v41, %v2148_v42 }
 0x1e2   : > { %632 = vmin.xlane.f32.xlu1 %v631_v43 }
 0x1e9   : > { %v457_v44 = vpop.f32.mrf.mxu2  ;;  %v522_v45 = vpop.f32.mrf.mxu3 }
 0x1ea   : > { %v562_v46 = vsub.f32 1.0, %v457_v44  ;;  %v563_v47 = vsub.f32 1.0, %v522_v45 }
 0x1ec   : > { %v2152_v48 = vmax.f32 %v562_v46, 0.0  ;;  %v2154_v49 = vmax.f32 %v563_v47, 0.0 }
 0x1ee   : > { %v634_v50 = vmin.f32 %v2152_v48, %v2154_v49 }
 0x1f0   : > { %635 = vmin.xlane.f32.xlu2 %v634_v50 }
 0x1f1   : > { %v460_v51 = vpop.f32.mrf.mxu2  ;;  %v525_v52 = vpop.f32.mrf.mxu3 }
 0x1f2   : > { %v564_v53 = vsub.f32 1.0, %v460_v51  ;;  %v565_v54 = vsub.f32 1.0, %v525_v52 }
 0x1f4   : > { %v2158_v55 = vmax.f32 %v564_v53, 0.0  ;;  %v2160_v58 = vmax.f32 %v565_v54, 0.0 }
 0x1f6   : > { %v637_v59 = vmin.f32 %v2158_v55, %v2160_v58 }
 0x1f8   : > { %638 = vmin.xlane.f32.xlu1 %v637_v59 }
 0x1f9   : > { %v463_v60 = vpop.f32.mrf.mxu2  ;;  %v528_v61 = vpop.f32.mrf.mxu3 }
 0x1fa   : > { %v566_v62 = vsub.f32 1.0, %v463_v60  ;;  %v567_v1 = vsub.f32 1.0, %v528_v61 }
 0x1fc   : > { %v2164_v2 = vmax.f32 %v566_v62, 0.0  ;;  %v2166_v3 = vmax.f32 %v567_v1, 0.0 }
 0x1fe   : > { %v640_v4 = vmin.f32 %v2164_v2, %v2166_v3 }
 0x200   : > { %641 = vmin.xlane.f32.xlu2 %v640_v4 }
 0x201   : > { %v466_v5 = vpop.f32.mrf.mxu2  ;;  %v531_v8 = vpop.f32.mrf.mxu3 }
 0x202   : > { %v568_v9 = vsub.f32 1.0, %v466_v5  ;;  %v569_v10 = vsub.f32 1.0, %v531_v8 }
 0x204   : > { %v2170_v11 = vmax.f32 %v568_v9, 0.0  ;;  %v2172_v12 = vmax.f32 %v569_v10, 0.0 }
 0x206   : > { %v643_v15 = vmin.f32 %v2170_v11, %v2172_v12 }
 0x208   : > { %644 = vmin.xlane.f32.xlu1 %v643_v15 }
 0x209   : > { %v469_v16 = vpop.f32.mrf.mxu2  ;;  %v534_v17 = vpop.f32.mrf.mxu3 }
 0x20a   : > { %v570_v18 = vsub.f32 1.0, %v469_v16  ;;  %v571_v19 = vsub.f32 1.0, %v534_v17 }
 0x20c   : > { %v2176_v22 = vmax.f32 %v570_v18, 0.0  ;;  %v2178_v23 = vmax.f32 %v571_v19, 0.0 }
 0x20e   : > { %v646_v24 = vmin.f32 %v2176_v22, %v2178_v23 }
 0x210   : > { %647 = vmin.xlane.f32.xlu2 %v646_v24 }
 0x211   : > { %v472_v25 = vpop.f32.mrf.mxu2  ;;  %v537_v26 = vpop.f32.mrf.mxu3 }
 0x212   : > { %v572_v29 = vsub.f32 1.0, %v472_v25  ;;  %v573_v30 = vsub.f32 1.0, %v537_v26 }
 0x214   : > { %v2182_v31 = vmax.f32 %v572_v29, 0.0  ;;  %v2184_v32 = vmax.f32 %v573_v30, 0.0 }
 0x216   : > { %v649_v33 = vmin.f32 %v2182_v31, %v2184_v32 }
 0x218   : > { %650 = vmin.xlane.f32.xlu1 %v649_v33 }
 0x219   : > { %v475_v36 = vpop.f32.mrf.mxu2  ;;  %v540_v37 = vpop.f32.mrf.mxu3 }
 0x21a   : > { %v574_v38 = vsub.f32 1.0, %v475_v36  ;;  %v575_v39 = vsub.f32 1.0, %v540_v37 }
 0x21c   : > { %v2188_v40 = vmax.f32 %v574_v38, 0.0  ;;  %v2190_v43 = vmax.f32 %v575_v39, 0.0 }
 0x21d   : > { %v612_v44 = vpop.xlane.xlu0 %611 }
 0x21e   : > { %v658_v45 = vadd.f32 0.001, %v612_v44  ;;  %v652_v46 = vmin.f32 %v2188_v40, %v2190_v43 }
 0x220   : > { %v674_v47 = vmul.f32 0.1, %v658_v45  ;;  %653 = vmin.xlane.f32.xlu2 %v652_v46 }
 0x221   : > { %v478_v50 = vpop.f32.mrf.mxu2  ;;  %v543_v51 = vpop.f32.mrf.mxu3 }
 0x222   : > { %1519 = vrcp.f32 %v674_v47  ;;  %v576_v52 = vsub.f32 1.0, %v478_v50  ;;  %v577_v53 = vsub.f32 1.0, %v543_v51 }
 0x224   : > { %v2194_v54 = vmax.f32 %v576_v52, 0.0  ;;  %v2196_v59 = vmax.f32 %v577_v53, 0.0 }
 0x225   : > { %v615_v60 = vpop.xlane.xlu1 %614 }
 0x226   : > { %v659_v61 = vadd.f32 0.001, %v615_v60  ;;  %v655_v62 = vmin.f32 %v2194_v54, %v2196_v59 }
 0x228   : > { %v1520_v1 = vpop.eup %1519  ;;  %v675_v4 = vmul.f32 0.1, %v659_v61  ;;  %656 = vmin.xlane.f32.xlu1 %v655_v62 }
 0x229   : > { %v706_v5 = vmul.f32 %v1520_v1, %v612_v44  ;;  %v722_v8 = vmul.f32 %v1520_v1, %v2104_v56  ;;  %v723_v9 = vmul.f32 %v1520_v1, %v2106_v57 }
 0x22a   : > { %1521 = vrcp.f32 %v675_v4 }
 0x22b   : > { %v754_v10 = vsub.f32 %v706_v5, %v722_v8  ;;  %v755_v15 = vsub.f32 %v706_v5, %v723_v9 }
 0x22d   : > { %v786_v16 = vmul.f32 1.442695, %v754_v10  ;;  %v788_v17 = vmul.f32 1.442695, %v755_v15  ;;  %v618_v18 = vpop.xlane.xlu1 %617 }
 0x22e   : > { %v660_v19 = vadd.f32 0.001, %v618_v18 }
 0x22f   : > { %1523 = vpow2.f32 %v786_v16 }
 0x230   : > { %v1522_v24 = vpop.eup %1521  ;;  %1525 = vpow2.f32 %v788_v17  ;;  %v676_v25 = vmul.f32 0.1, %v660_v19 }
 0x231   : > { %v707_v26 = vmul.f32 %v1522_v24, %v615_v60  ;;  %v724_v29 = vmul.f32 %v1522_v24, %v2110_v63  ;;  %v725_v30 = vmul.f32 %v1522_v24, %v2112_v0 }
 0x232   : > { %1527 = vrcp.f32 %v676_v25 }
 0x233   : > { %v756_v56 = vsub.f32 %v707_v26, %v724_v29  ;;  %v757_v33 = vsub.f32 %v707_v26, %v725_v30 }
 0x235   : > { %v1524_v57 = vpop.eup %1523  ;;  %v790_v36 = vmul.f32 1.442695, %v756_v56  ;;  %v792_v37 = vmul.f32 1.442695, %v757_v33  ;;  %v621_v38 = vpop.xlane.xlu2 %620 }
 0x236   : > { %v1526_v39 = vpop.eup %1525  ;;  %v661_v44 = vadd.f32 0.001, %v621_v38 }
 0x237   : > { %1529 = vpow2.f32 %v790_v36  ;;  %v850_v45 = vadd.f32 %v1526_v39, %v1524_v57 }
 0x238   : > { %v1528_v46 = vpop.eup %1527  ;;  %1531 = vpow2.f32 %v792_v37  ;;  %v677_v47 = vmul.f32 0.1, %v661_v44 }
 0x239   : > { %v708_v50 = vmul.f32 %v1528_v46, %v618_v18  ;;  %v726_v51 = vmul.f32 %v1528_v46, %v2116_v6  ;;  %v727_v63 = vmul.f32 %v1528_v46, %v2118_v7  ;;  %851 = vadd.xlane.f32.xlu2 %v850_v45 }
 0x23a   : > { %1533 = vrcp.f32 %v677_v47 }
 0x23b   : > { %v758_v0 = vsub.f32 %v708_v50, %v726_v51  ;;  %v759_v52 = vsub.f32 %v708_v50, %v727_v63 }
 0x23d   : > { %v1530_v53 = vpop.eup %1529  ;;  %v794_v60 = vmul.f32 1.442695, %v758_v0  ;;  %v796_v61 = vmul.f32 1.442695, %v759_v52  ;;  %v624_v62 = vpop.xlane.xlu2 %623 }
 0x23e   : > { %v1532_v1 = vpop.eup %1531  ;;  %v662_v4 = vadd.f32 0.001, %v624_v62 }
 0x23f   : > { %1535 = vpow2.f32 %v794_v60  ;;  %v853_v5 = vadd.f32 %v1532_v1, %v1530_v53 }
 0x240   : > { %v1534_v8 = vpop.eup %1533  ;;  %1537 = vpow2.f32 %v796_v61  ;;  %v678_v9 = vmul.f32 0.1, %v662_v4 }
 0x241   : > { %v709_v10 = vmul.f32 %v1534_v8, %v621_v38  ;;  %v728_v6 = vmul.f32 %v1534_v8, %v2122_v13  ;;  %v729_v7 = vmul.f32 %v1534_v8, %v2124_v14  ;;  %854 = vadd.xlane.f32.xlu1 %v853_v5 }
 0x242   : > { %1539 = vrcp.f32 %v678_v9 }
 0x243   : > { %v760_v15 = vsub.f32 %v709_v10, %v728_v6  ;;  %v761_v16 = vsub.f32 %v709_v10, %v729_v7 }
 0x245   : > { %v1536_v17 = vpop.eup %1535  ;;  %v798_v18 = vmul.f32 1.442695, %v760_v15  ;;  %v800_v19 = vmul.f32 1.442695, %v761_v16  ;;  %v627_v24 = vpop.xlane.xlu1 %626 }
 0x246   : > { %v1538_v25 = vpop.eup %1537  ;;  %v663_v26 = vadd.f32 0.001, %v627_v24 }
 0x247   : > { %1541 = vpow2.f32 %v798_v18  ;;  %v856_v29 = vadd.f32 %v1538_v25, %v1536_v17 }
 0x248   : > { %v1540_v30 = vpop.eup %1539  ;;  %1543 = vpow2.f32 %v800_v19  ;;  %v679_v56 = vmul.f32 0.1, %v663_v26 }
 0x249   : > { %v710_v33 = vmul.f32 %v1540_v30, %v624_v62  ;;  %v730_v13 = vmul.f32 %v1540_v30, %v2128_v20  ;;  %v731_v14 = vmul.f32 %v1540_v30, %v2130_v21  ;;  %857 = vadd.xlane.f32.xlu2 %v856_v29 }
 0x24a   : > { %1545 = vrcp.f32 %v679_v56 }
 0x24b   : > { %v762_v57 = vsub.f32 %v710_v33, %v730_v13  ;;  %v763_v36 = vsub.f32 %v710_v33, %v731_v14 }
 0x24d   : > { %v1542_v37 = vpop.eup %1541  ;;  %v802_v38 = vmul.f32 1.442695, %v762_v57  ;;  %v804_v39 = vmul.f32 1.442695, %v763_v36  ;;  %v630_v44 = vpop.xlane.xlu2 %629 }
 0x24e   : > { %v1544_v45 = vpop.eup %1543  ;;  %v664_v46 = vadd.f32 0.001, %v630_v44 }
 0x24f   : > { %1547 = vpow2.f32 %v802_v38  ;;  %v859_v47 = vadd.f32 %v1544_v45, %v1542_v37 }
 0x250   : > { %v1546_v50 = vpop.eup %1545  ;;  %1549 = vpow2.f32 %v804_v39  ;;  %v680_v51 = vmul.f32 0.1, %v664_v46 }
 0x251   : > { %v711_v63 = vmul.f32 %v1546_v50, %v627_v24  ;;  %v732_v20 = vmul.f32 %v1546_v50, %v2134_v27  ;;  %v733_v21 = vmul.f32 %v1546_v50, %v2136_v28  ;;  %860 = vadd.xlane.f32.xlu1 %v859_v47 }
 0x252   : > { %1551 = vrcp.f32 %v680_v51 }
 0x253   : > { %v764_v0 = vsub.f32 %v711_v63, %v732_v20  ;;  %v765_v52 = vsub.f32 %v711_v63, %v733_v21 }
 0x255   : > { %v1548_v53 = vpop.eup %1547  ;;  %v806_v60 = vmul.f32 1.442695, %v764_v0  ;;  %v808_v61 = vmul.f32 1.442695, %v765_v52  ;;  %v633_v62 = vpop.xlane.xlu1 %632 }
 0x256   : > { %v1550_v1 = vpop.eup %1549  ;;  %v665_v4 = vadd.f32 0.001, %v633_v62 }
 0x257   : > { %1553 = vpow2.f32 %v806_v60  ;;  %v862_v5 = vadd.f32 %v1550_v1, %v1548_v53 }
 0x258   : > { %v1552_v8 = vpop.eup %1551  ;;  %1555 = vpow2.f32 %v808_v61  ;;  %v681_v9 = vmul.f32 0.1, %v665_v4 }
 0x259   : > { %v712_v10 = vmul.f32 %v1552_v8, %v630_v44  ;;  %v734_v27 = vmul.f32 %v1552_v8, %v2140_v34  ;;  %v735_v28 = vmul.f32 %v1552_v8, %v2142_v35  ;;  %863 = vadd.xlane.f32.xlu2 %v862_v5 }
 0x25a   : > { %1557 = vrcp.f32 %v681_v9 }
 0x25b   : > { %v766_v6 = vsub.f32 %v712_v10, %v734_v27  ;;  %v767_v7 = vsub.f32 %v712_v10, %v735_v28 }
 0x25d   : > { %v1554_v15 = vpop.eup %1553  ;;  %v810_v16 = vmul.f32 1.442695, %v766_v6  ;;  %v812_v17 = vmul.f32 1.442695, %v767_v7 }
 0x25e   : > { %v1556_v18 = vpop.eup %1555 }
 0x25f   : > { %1559 = vpow2.f32 %v810_v16  ;;  %v865_v19 = vadd.f32 %v1556_v18, %v1554_v15 }
 0x260   : > { %v1558_v24 = vpop.eup %1557  ;;  %1561 = vpow2.f32 %v812_v17 }
 0x261   : > { %v713_v25 = vmul.f32 %v1558_v24, %v633_v62  ;;  %v736_v26 = vmul.f32 %v1558_v24, %v2146_v41  ;;  %v737_v29 = vmul.f32 %v1558_v24, %v2148_v42  ;;  %866 = vadd.xlane.f32.xlu1 %v865_v19 }
 0x263   : > { %v768_v34 = vsub.f32 %v713_v25, %v736_v26  ;;  %v769_v35 = vsub.f32 %v713_v25, %v737_v29  ;;  %v636_v30 = vpop.xlane.xlu2 %635 }
 0x264   : > { %v666_v56 = vadd.f32 0.001, %v636_v30 }
 0x265   : > { %v1560_v33 = vpop.eup %1559  ;;  %v814_v13 = vmul.f32 1.442695, %v768_v34  ;;  %v816_v14 = vmul.f32 1.442695, %v769_v35 }
 0x266   : > { %v1562_v57 = vpop.eup %1561  ;;  %v682_v36 = vmul.f32 0.1, %v666_v56 }
 0x267   : > { %1563 = vpow2.f32 %v814_v13  ;;  %v868_v37 = vadd.f32 %v1562_v57, %v1560_v33 }
 0x268   : > { %1565 = vpow2.f32 %v816_v14 }
 0x269   : > { %1567 = vrcp.f32 %v682_v36  ;;  %869 = vadd.xlane.f32.xlu2 %v868_v37 }
 0x26b   : > { %v639_v38 = vpop.xlane.xlu1 %638 }
 0x26c   : > { %v667_v39 = vadd.f32 0.001, %v639_v38 }
 0x26d   : > { %v1564_v41 = vpop.eup %1563 }
 0x26e   : > { %v1566_v44 = vpop.eup %1565  ;;  %v683_v42 = vmul.f32 0.1, %v667_v39 }
 0x26f   : > { %v1568_v45 = vpop.eup %1567  ;;  %v871_v46 = vadd.f32 %v1566_v44, %v1564_v41 }
 0x270   : > { %v714_v47 = vmul.f32 %v1568_v45, %v636_v30  ;;  %v738_v50 = vmul.f32 %v1568_v45, %v2152_v48  ;;  %v739_v51 = vmul.f32 %v1568_v45, %v2154_v49  ;;  %1569 = vrcp.f32 %v683_v42 }
 0x271   : > { %872 = vadd.xlane.f32.xlu1 %v871_v46 }
 0x272   : > { %v770_v63 = vsub.f32 %v714_v47, %v738_v50  ;;  %v771_v20 = vsub.f32 %v714_v47, %v739_v51 }
 0x273   : > { %v642_v21 = vpop.xlane.xlu2 %641 }
 0x274   : > { %v818_v0 = vmul.f32 1.442695, %v770_v63  ;;  %v820_v52 = vmul.f32 1.442695, %v771_v20  ;;  %v668_v53 = vadd.f32 0.001, %v642_v21 }
 0x276   : > { %v1570_v60 = vpop.eup %1569  ;;  %1571 = vpow2.f32 %v818_v0  ;;  %v684_v61 = vmul.f32 0.1, %v668_v53 }
 0x277   : > { %1573 = vpow2.f32 %v820_v52  ;;  %v715_v62 = vmul.f32 %v1570_v60, %v639_v38  ;;  %v740_v1 = vmul.f32 %v1570_v60, %v2158_v55  ;;  %v741_v4 = vmul.f32 %v1570_v60, %v2160_v58 }
 0x278   : > { %1575 = vrcp.f32 %v684_v61 }
 0x279   : > { %v772_v48 = vsub.f32 %v715_v62, %v740_v1  ;;  %v773_v49 = vsub.f32 %v715_v62, %v741_v4 }
 0x27b   : > { %v822_v5 = vmul.f32 1.442695, %v772_v48  ;;  %v824_v8 = vmul.f32 1.442695, %v773_v49  ;;  %v645_v9 = vpop.xlane.xlu1 %644 }
 0x27c   : > { %v1572_v10 = vpop.eup %1571  ;;  %v669_v27 = vadd.f32 0.001, %v645_v9 }
 0x27d   : > { %v1574_v28 = vpop.eup %1573  ;;  %1577 = vpow2.f32 %v822_v5 }
 0x27e   : > { %v1576_v6 = vpop.eup %1575  ;;  %1579 = vpow2.f32 %v824_v8  ;;  %v685_v7 = vmul.f32 0.1, %v669_v27  ;;  %v874_v15 = vadd.f32 %v1574_v28, %v1572_v10 }
 0x27f   : > { %v716_v16 = vmul.f32 %v1576_v6, %v642_v21  ;;  %v742_v17 = vmul.f32 %v1576_v6, %v2164_v2  ;;  %v743_v55 = vmul.f32 %v1576_v6, %v2166_v3 }
 0x280   : > { %1581 = vrcp.f32 %v685_v7  ;;  %875 = vadd.xlane.f32.xlu2 %v874_v15 }
 0x281   : > { %v774_v58 = vsub.f32 %v716_v16, %v742_v17  ;;  %v775_v18 = vsub.f32 %v716_v16, %v743_v55 }
 0x283   : > { %v1578_v19 = vpop.eup %1577  ;;  %v826_v24 = vmul.f32 1.442695, %v774_v58  ;;  %v828_v25 = vmul.f32 1.442695, %v775_v18  ;;  %v648_v26 = vpop.xlane.xlu2 %647 }
 0x284   : > { %v1580_v29 = vpop.eup %1579  ;;  %v670_v34 = vadd.f32 0.001, %v648_v26 }
 0x285   : > { %1583 = vpow2.f32 %v826_v24  ;;  %v877_v35 = vadd.f32 %v1580_v29, %v1578_v19 }
 0x286   : > { %v1582_v30 = vpop.eup %1581  ;;  %1585 = vpow2.f32 %v828_v25  ;;  %v686_v56 = vmul.f32 0.1, %v670_v34 }
 0x287   : > { %v717_v33 = vmul.f32 %v1582_v30, %v645_v9  ;;  %v744_v2 = vmul.f32 %v1582_v30, %v2170_v11  ;;  %v745_v3 = vmul.f32 %v1582_v30, %v2172_v12  ;;  %878 = vadd.xlane.f32.xlu1 %v877_v35 }
 0x288   : > { %1587 = vrcp.f32 %v686_v56 }
 0x289   : > { %v776_v13 = vsub.f32 %v717_v33, %v744_v2  ;;  %v777_v14 = vsub.f32 %v717_v33, %v745_v3 }
 0x28b   : > { %v1584_v57 = vpop.eup %1583  ;;  %v830_v36 = vmul.f32 1.442695, %v776_v13  ;;  %v832_v37 = vmul.f32 1.442695, %v777_v14  ;;  %v651_v38 = vpop.xlane.xlu1 %650 }
 0x28c   : > { %v1586_v39 = vpop.eup %1585  ;;  %v671_v41 = vadd.f32 0.001, %v651_v38 }
 0x28d   : > { %1589 = vpow2.f32 %v830_v36  ;;  %v880_v44 = vadd.f32 %v1586_v39, %v1584_v57 }
 0x28e   : > { %v1588_v42 = vpop.eup %1587  ;;  %1591 = vpow2.f32 %v832_v37  ;;  %v687_v45 = vmul.f32 0.1, %v671_v41 }
 0x28f   : > { %v718_v46 = vmul.f32 %v1588_v42, %v648_v26  ;;  %v746_v11 = vmul.f32 %v1588_v42, %v2176_v22  ;;  %v747_v12 = vmul.f32 %v1588_v42, %v2178_v23  ;;  %881 = vadd.xlane.f32.xlu2 %v880_v44 }
 0x290   : > { %1593 = vrcp.f32 %v687_v45 }
 0x291   : > { %v778_v47 = vsub.f32 %v718_v46, %v746_v11  ;;  %v779_v50 = vsub.f32 %v718_v46, %v747_v12 }
 0x293   : > { %v1590_v51 = vpop.eup %1589  ;;  %v834_v63 = vmul.f32 1.442695, %v778_v47  ;;  %v836_v20 = vmul.f32 1.442695, %v779_v50  ;;  %v654_v21 = vpop.xlane.xlu2 %653 }
 0x294   : > { %v1592_v0 = vpop.eup %1591  ;;  %v672_v52 = vadd.f32 0.001, %v654_v21 }
 0x295   : > { %1595 = vpow2.f32 %v834_v63  ;;  %v883_v53 = vadd.f32 %v1592_v0, %v1590_v51 }
 0x296   : > { %v1594_v60 = vpop.eup %1593  ;;  %1597 = vpow2.f32 %v836_v20  ;;  %v688_v61 = vmul.f32 0.1, %v672_v52 }
 0x297   : > { %v719_v62 = vmul.f32 %v1594_v60, %v651_v38  ;;  %v748_v22 = vmul.f32 %v1594_v60, %v2182_v31  ;;  %v749_v23 = vmul.f32 %v1594_v60, %v2184_v32  ;;  %884 = vadd.xlane.f32.xlu1 %v883_v53 }
 0x298   : > { %1599 = vrcp.f32 %v688_v61 }
 0x299   : > { %v780_v1 = vsub.f32 %v719_v62, %v748_v22  ;;  %v781_v4 = vsub.f32 %v719_v62, %v749_v23 }
 0x29b   : > { %v1596_v48 = vpop.eup %1595  ;;  %v838_v49 = vmul.f32 1.442695, %v780_v1  ;;  %v840_v5 = vmul.f32 1.442695, %v781_v4  ;;  %v657_v8 = vpop.xlane.xlu1 %656 }
 0x29c   : > { %v1598_v9 = vpop.eup %1597  ;;  %v673_v10 = vadd.f32 0.001, %v657_v8 }
 0x29d   : > { %1601 = vpow2.f32 %v838_v49  ;;  %v886_v27 = vadd.f32 %v1598_v9, %v1596_v48 }
 0x29e   : > { %v1600_v28 = vpop.eup %1599  ;;  %1603 = vpow2.f32 %v840_v5  ;;  %v689_v6 = vmul.f32 0.1, %v673_v10 }
 0x29f   : > { %v720_v7 = vmul.f32 %v1600_v28, %v654_v21  ;;  %v750_v31 = vmul.f32 %v1600_v28, %v2188_v40  ;;  %v751_v32 = vmul.f32 %v1600_v28, %v2190_v43  ;;  %887 = vadd.xlane.f32.xlu2 %v886_v27 }
 0x2a0   : > { %1605 = vrcp.f32 %v689_v6 }
 0x2a1   : > { %v782_v15 = vsub.f32 %v720_v7, %v750_v31  ;;  %v783_v16 = vsub.f32 %v720_v7, %v751_v32 }
 0x2a3   : > { %v1602_v17 = vpop.eup %1601  ;;  %v842_v55 = vmul.f32 1.442695, %v782_v15  ;;  %v844_v58 = vmul.f32 1.442695, %v783_v16 }
 0x2a4   : > { %v1604_v18 = vpop.eup %1603 }
 0x2a5   : > { %1607 = vpow2.f32 %v842_v55  ;;  %v889_v19 = vadd.f32 %v1604_v18, %v1602_v17 }
 0x2a6   : > { %v1606_v24 = vpop.eup %1605  ;;  %1609 = vpow2.f32 %v844_v58 }
 0x2a7   : > { %v721_v25 = vmul.f32 %v1606_v24, %v657_v8  ;;  %v752_v26 = vmul.f32 %v1606_v24, %v2194_v54  ;;  %v753_v29 = vmul.f32 %v1606_v24, %v2196_v59  ;;  %890 = vadd.xlane.f32.xlu1 %v889_v19 }
 0x2a9   : > { %v784_v40 = vsub.f32 %v721_v25, %v752_v26  ;;  %v785_v43 = vsub.f32 %v721_v25, %v753_v29 }
 0x2ab   : > { %v1608_v34 = vpop.eup %1607  ;;  %v846_v35 = vmul.f32 1.442695, %v784_v40  ;;  %v848_v30 = vmul.f32 1.442695, %v785_v43 }
 0x2ac   : > { %v1610_v56 = vpop.eup %1609  ;;  %v852_v14 = vpop.xlane.xlu2 %851 }
 0x2ad   : > { %1611 = vpow2.f32 %v846_v35  ;;  %v892_v33 = vadd.f32 %v1610_v56, %v1608_v34  ;;  %v923_v21 = vand.u32 2147483647, %v852_v14  ;;  %v925_v62 = vand.u32 2147483648, %v852_v14 }
 0x2ae   : > { %1613 = vpow2.f32 %v848_v30  ;;  %vm919_vm10 = vweird.f32 %v852_v14 }
 0x2af   : > { %893 = vadd.xlane.f32.xlu2 %v892_v33  ;;  %1615 = vrcp.f32 %v852_v14  ;;  %vm2279_vm12 = vcmp.eq.f32.partialorder %v923_v21, 8.507059e+37  ;;  %v926_v28 = vor.u32 1.1754944e-38, %v925_v62 }
 0x2b3   : > { %v1612_v2 = vpop.eup %1611 }
 0x2b4   : > { %v1614_v3 = vpop.eup %1613  ;;  %v2232_v57 = vpop.xlane.xlu1 %854 }
 0x2b5   : > { %v895_v13 = vadd.f32 %v1614_v3, %v1612_v2  ;;  %1617 = vrcp.f32 %v2232_v57  ;;  %v2240_v36 = vpop.eup %1615  ;;  %vm934_vm14 = vweird.f32 %v2232_v57  ;;  %v940_v9 = vand.u32 2147483648, %v2232_v57 }
 0x2b6   : > { %v915_v39 = vmul.f32 %v2240_v36, %v852_v14  ;;  %vm920_vm8 = vweird.f32 %v2240_v36  ;;  %v938_v7 = vand.u32 2147483647, %v2232_v57 }
 0x2b7   : > { %896 = vadd.xlane.f32.xlu1 %v895_v13  ;;  %vm2290_vm13 = vmor %vm919_vm10, %vm920_vm8  ;;  %v941_v18 = vor.u32 1.1754944e-38, %v940_v9 }
 0x2b8   : > { %v916_v46 = vsub.f32 1.0, %v915_v39  ;;  %vm939_vm3 = vcmp.eq.f32.partialorder %v938_v7, 8.507059e+37 }
 0x2ba   : > { %v917_v63 = vmul.f32 %v2240_v36, %v916_v46 }
 0x2bb   : > { %v2243_v37 = vpop.eup %1617 }
 0x2bc   : > { %v2234_v54 = vpop.xlane.xlu2 %857  ;;  %v930_v41 = vmul.f32 %v2243_v37, %v2232_v57  ;;  %v918_v22 = vadd.f32 %v2240_v36, %v917_v63  ;;  %vm935_vm11 = vweird.f32 %v2243_v37 }
 0x2bd   : > { %1619 = vrcp.f32 %v2234_v54  ;;  %vm2298_vm15 = vmor %vm934_vm14, %vm935_vm11  ;;  %v953_v31 = vand.u32 2147483647, %v2234_v54  ;;  %v955_v32 = vand.u32 2147483648, %v2234_v54  ;;  %vm949_vm2 = vweird.f32 %v2234_v54 }
 0x2be   : > { %v931_v11 = vsub.f32 1.0, %v930_v41  ;;  %v922_v15 = vsel %vm2290_vm13, %v2240_v36, %v918_v22 }
 0x2bf   : > { %v927_v29 = vsel %vm2279_vm12, %v926_v28, %v922_v15  ;;  %vm2332_vm6 = vcmp.eq.f32.partialorder %v953_v31, 8.507059e+37  ;;  %v956_v30 = vor.u32 1.1754944e-38, %v955_v32 }
 0x2c0   : > { %v932_v20 = vmul.f32 %v2243_v37, %v931_v11 }
 0x2c2   : > { %v933_v23 = vadd.f32 %v2243_v37, %v932_v20 }
 0x2c3   : > { %v2250_v44 = vpop.eup %1619 }
 0x2c4   : > { %v2237_v59 = vpop.xlane.xlu1 %860  ;;  %v945_v12 = vmul.f32 %v2250_v44, %v2234_v54  ;;  %v937_v16 = vsel %vm2298_vm15, %v2243_v37, %v933_v23  ;;  %vm950_vm0 = vweird.f32 %v2250_v44  ;;  %v1155_v37 = vsel %vm1154_vm9, %v927_v29, 0.0 }
 0x2c5   : > { %1621 = vrcp.f32 %v2237_v59  ;;  %vm2326_vm4 = vmor %vm949_vm2, %vm950_vm0  ;;  %vm964_vm5 = vweird.f32 %v2237_v59  ;;  %v970_v43 = vand.u32 2147483648, %v2237_v59  ;;  %v942_v34 = vsel %vm939_vm3, %v941_v18, %v937_v16 }
 0x2c6   : > { %v946_v0 = vsub.f32 1.0, %v945_v12  ;;  %v968_v33 = vand.u32 2147483647, %v2237_v59  ;;  %v1156_v39 = vsel %vm1154_vm9, %v942_v34, 0.0 }
 0x2c7   : > { %v971_v41 = vor.u32 1.1754944e-38, %v970_v43 }
 0x2c8   : > { %v947_v4 = vmul.f32 %v2250_v44, %v946_v0  ;;  %vm969_vm10 = vcmp.eq.f32.partialorder %v968_v33, 8.507059e+37 }
 0x2ca   : > { %v948_v17 = vadd.f32 %v2250_v44, %v947_v4 }
 0x2cb   : > { %v2253_v42 = vpop.eup %1621 }
 0x2cc   : > { %v2245_v38 = vpop.xlane.xlu2 %863  ;;  %v960_v47 = vmul.f32 %v2253_v42, %v2237_v59  ;;  %vm965_vm1 = vweird.f32 %v2253_v42  ;;  %v952_v2 = vsel %vm2326_vm4, %v2250_v44, %v948_v17 }
 0x2cd   : > { %1623 = vrcp.f32 %v2245_v38  ;;  %vm2338_vm7 = vmor %vm964_vm5, %vm965_vm1  ;;  %v985_v44 = vand.u32 2147483648, %v2245_v38  ;;  %vm979_vm11 = vweird.f32 %v2245_v38  ;;  %v983_v46 = vand.u32 2147483647, %v2245_v38 }
 0x2ce   : > { %v961_v52 = vsub.f32 1.0, %v960_v47 }
 0x2cf   : > { %v986_v62 = vor.u32 1.1754944e-38, %v985_v44  ;;  %vm984_vm14 = vcmp.eq.f32.partialorder %v983_v46, 8.507059e+37 }
 0x2d0   : > { %v962_v48 = vmul.f32 %v2253_v42, %v961_v52  ;;  %v1157_v52 = vadd.f32 %v1156_v39, %v1155_v37 }
 0x2d2   : > { %v963_v55 = vadd.f32 %v2253_v42, %v962_v48 }
 0x2d3   : > { %v2264_v51 = vpop.eup %1623 }
 0x2d4   : > { %v2255_v45 = vpop.xlane.xlu1 %866  ;;  %v975_v53 = vmul.f32 %v2264_v51, %v2245_v38  ;;  %v967_v3 = vsel %vm2338_vm7, %v2253_v42, %v963_v55  ;;  %vm980_vm8 = vweird.f32 %v2264_v51  ;;  %v957_v42 = vsel %vm2332_vm6, %v956_v30, %v952_v2 }
 0x2d5   : > { %1625 = vrcp.f32 %v2255_v45  ;;  %v972_v11 = vsel %vm969_vm10, %v971_v41, %v967_v3  ;;  %vm2366_vm12 = vmor %vm979_vm11, %vm980_vm8  ;;  %v1000_v22 = vand.u32 2147483648, %v2255_v45  ;;  %vm994_vm15 = vweird.f32 %v2255_v45 }
 0x2d6   : > { %v976_v10 = vsub.f32 1.0, %v975_v53  ;;  %v1158_v53 = vsel %vm1154_vm9, %v957_v42, 0.0  ;;  %v1160_v1 = vsel %vm1154_vm9, %v972_v11, 0.0 }
 0x2d7   : > { %v1159_v7 = vadd.f32 %v1158_v53, %v1157_v52  ;;  %v1001_v31 = vor.u32 1.1754944e-38, %v1000_v22 }
 0x2d8   : > { %v977_v19 = vmul.f32 %v2264_v51, %v976_v10 }
 0x2d9   : > { %v1161_v17 = vadd.f32 %v1160_v1, %v1159_v7 }
 0x2da   : > { %v978_v54 = vadd.f32 %v2264_v51, %v977_v19 }
 0x2db   : > { %v2273_v61 = vpop.eup %1625 }
 0x2dc   : > { %v2262_v50 = vpop.xlane.xlu2 %869  ;;  %v990_v27 = vmul.f32 %v2273_v61, %v2255_v45  ;;  %v982_v20 = vsel %vm2366_vm12, %v2264_v51, %v978_v54  ;;  %vm995_vm13 = vweird.f32 %v2273_v61  ;;  %v998_v51 = vand.u32 2147483647, %v2255_v45 }
 0x2dd   : > { %1627 = vrcp.f32 %v2262_v50  ;;  %v987_v4 = vsel %vm984_vm14, %v986_v62, %v982_v20  ;;  %vm2388_vm0 = vmor %vm994_vm15, %vm995_vm13  ;;  %vm1009_vm2 = vweird.f32 %v2262_v50  ;;  %v1015_v32 = vand.u32 2147483648, %v2262_v50 }
 0x2de   : > { %v991_v24 = vsub.f32 1.0, %v990_v27  ;;  %v1162_v15 = vsel %vm1154_vm9, %v987_v4, 0.0  ;;  %vm999_vm3 = vcmp.eq.f32.partialorder %v998_v51, 8.507059e+37  ;;  %v1013_v16 = vand.u32 2147483647, %v2262_v50 }
 0x2df   : > { %v1163_v40 = vadd.f32 %v1162_v15, %v1161_v17 }
 0x2e0   : > { %v992_v59 = vmul.f32 %v2273_v61, %v991_v24  ;;  %vm1014_vm6 = vcmp.eq.f32.partialorder %v1013_v16, 8.507059e+37 }
 0x2e2   : > { %v993_v21 = vadd.f32 %v2273_v61, %v992_v59 }
 0x2e3   : > { %v2288_v5 = vpop.eup %1627 }
 0x2e4   : > { %v2271_v60 = vpop.xlane.xlu1 %872  ;;  %v1005_v58 = vmul.f32 %v2288_v5, %v2262_v50  ;;  %vm1010_vm1 = vweird.f32 %v2288_v5  ;;  %v997_v27 = vsel %vm2388_vm0, %v2273_v61, %v993_v21  ;;  %v1016_v50 = vor.u32 1.1754944e-38, %v1015_v32 }
 0x2e5   : > { %1629 = vrcp.f32 %v2271_v60  ;;  %vm2408_vm4 = vmor %vm1009_vm2, %vm1010_vm1  ;;  %v1002_v55 = vsel %vm999_vm3, %v1001_v31, %v997_v27  ;;  %v1030_v43 = vand.u32 2147483648, %v2271_v60  ;;  %vm1024_vm7 = vweird.f32 %v2271_v60 }
 0x2e6   : > { %v1006_v13 = vsub.f32 1.0, %v1005_v58  ;;  %v1164_v35 = vsel %vm1154_vm9, %v1002_v55, 0.0 }
 0x2e7   : > { %v1165_v41 = vadd.f32 %v1164_v35, %v1163_v40 }
 0x2e8   : > { %v1007_v47 = vmul.f32 %v2288_v5, %v1006_v13 }
 0x2ea   : > { %v1008_v8 = vadd.f32 %v2288_v5, %v1007_v47 }
 0x2eb   : > { %v2322_v26 = vpop.eup %1629 }
 0x2ec   : > { %v1020_v36 = vmul.f32 %v2322_v26, %v2271_v60  ;;  %v1012_v58 = vsel %vm2408_vm4, %v2288_v5, %v1008_v8  ;;  %vm1025_vm5 = vweird.f32 %v2322_v26  ;;  %v1028_v5 = vand.u32 2147483647, %v2271_v60 }
 0x2ed   : > { %v1017_v56 = vsel %vm1014_vm6, %v1016_v50, %v1012_v58  ;;  %vm2430_vm8 = vmor %vm1024_vm7, %vm1025_vm5 }
 0x2ee   : > { %v1021_v38 = vsub.f32 1.0, %v1020_v36  ;;  %v1031_v36 = vor.u32 1.1754944e-38, %v1030_v43  ;;  %v1166_v44 = vsel %vm1154_vm9, %v1017_v56, 0.0  ;;  %vm1029_vm12 = vcmp.eq.f32.partialorder %v1028_v5, 8.507059e+37 }
 0x2ef   : > { %v1167_v20 = vadd.f32 %v1166_v44, %v1165_v41 }
 0x2f0   : > { %v1022_v28 = vmul.f32 %v2322_v26, %v1021_v38 }
 0x2f2   : > { %v1023_v19 = vadd.f32 %v2322_v26, %v1022_v28 }
 0x2f3   : > { %v2286_v49 = vpop.xlane.xlu2 %875 }
 0x2f4   : > { %1631 = vrcp.f32 %v2286_v49  ;;  %v1027_v13 = vsel %vm2430_vm8, %v2322_v26, %v1023_v19  ;;  %v1045_v60 = vand.u32 2147483648, %v2286_v49  ;;  %vm1039_vm11 = vweird.f32 %v2286_v49 }
 0x2f5   : > { %v1043_v37 = vand.u32 2147483647, %v2286_v49  ;;  %v1032_v42 = vsel %vm1029_vm12, %v1031_v36, %v1027_v13 }
 0x2f6   : > { %v1046_v12 = vor.u32 1.1754944e-38, %v1045_v60  ;;  %v1168_v53 = vsel %vm1154_vm9, %v1032_v42, 0.0 }
 0x2f7   : > { %vm1044_vm15 = vcmp.eq.f32.partialorder %v1043_v37, 8.507059e+37 }
 0x2fa   : > { %v2320_v25 = vpop.xlane.xlu1 %878  ;;  %v2352_v57 = vpop.eup %1631 }
 0x2fb   : > { %1633 = vrcp.f32 %v2320_v25  ;;  %v1035_v63 = vmul.f32 %v2352_v57, %v2286_v49  ;;  %vm1040_vm10 = vweird.f32 %v2352_v57  ;;  %v1060_v46 = vand.u32 2147483648, %v2320_v25 }
 0x2fc   : > { %vm1041_vm13 = vmor %vm1039_vm11, %vm1040_vm10  ;;  %vm1054_vm0 = vweird.f32 %v2320_v25 }
 0x2fd   : > { %v1036_v9 = vsub.f32 1.0, %v1035_v63  ;;  %v1061_v22 = vor.u32 1.1754944e-38, %v1060_v46 }
 0x2ff   : > { %v1037_v18 = vmul.f32 %v2352_v57, %v1036_v9 }
 0x301   : > { %v2379_v0 = vpop.eup %1633  ;;  %v1038_v2 = vadd.f32 %v2352_v57, %v1037_v18 }
 0x302   : > { %v2350_v14 = vpop.xlane.xlu2 %881  ;;  %v1050_v45 = vmul.f32 %v2379_v0, %v2320_v25  ;;  %vm1055_vm14 = vweird.f32 %v2379_v0 }
 0x303   : > { %1635 = vrcp.f32 %v2350_v14  ;;  %v1042_v26 = vsel %vm1041_vm13, %v2352_v57, %v1038_v2  ;;  %v1058_v57 = vand.u32 2147483647, %v2320_v25  ;;  %vm2463_vm1 = vmor %vm1054_vm0, %vm1055_vm14  ;;  %v1073_v1 = vand.u32 2147483647, %v2350_v14 }
 0x304   : > { %v1051_v24 = vsub.f32 1.0, %v1050_v45  ;;  %v1047_v38 = vsel %vm1044_vm15, %v1046_v12, %v1042_v26  ;;  %v1075_v9 = vand.u32 2147483648, %v2350_v14  ;;  %v1169_v45 = vadd.f32 %v1168_v53, %v1167_v20 }
 0x305   : > { %v1170_v8 = vsel %vm1154_vm9, %v1047_v38, 0.0  ;;  %vm1059_vm3 = vcmp.eq.f32.partialorder %v1058_v57, 8.507059e+37  ;;  %vm1069_vm4 = vweird.f32 %v2350_v14  ;;  %vm1074_vm6 = vcmp.eq.f32.partialorder %v1073_v1, 8.507059e+37 }
 0x306   : > { %v1052_v54 = vmul.f32 %v2379_v0, %v1051_v24  ;;  %v1171_v32 = vadd.f32 %v1170_v8, %v1169_v45  ;;  %v1076_v61 = vor.u32 1.1754944e-38, %v1075_v9 }
 0x308   : > { %v1053_v47 = vadd.f32 %v2379_v0, %v1052_v54 }
 0x309   : > { %v2403_v6 = vpop.eup %1635 }
 0x30a   : > { %v2383_v23 = vpop.xlane.xlu1 %884  ;;  %v1065_v29 = vmul.f32 %v2403_v6, %v2350_v14  ;;  %v1057_v48 = vsel %vm2463_vm1, %v2379_v0, %v1053_v47  ;;  %vm1070_vm2 = vweird.f32 %v2403_v6 }
 0x30b   : > { %1637 = vrcp.f32 %v2383_v23  ;;  %v1088_v7 = vand.u32 2147483647, %v2383_v23  ;;  %v1062_v0 = vsel %vm1059_vm3, %v1061_v22, %v1057_v48  ;;  %vm1071_vm5 = vmor %vm1069_vm4, %vm1070_vm2  ;;  %vm1084_vm8 = vweird.f32 %v2383_v23 }
 0x30c   : > { %v1066_v59 = vsub.f32 1.0, %v1065_v29  ;;  %v1172_v14 = vsel %vm1154_vm9, %v1062_v0, 0.0  ;;  %v1090_v18 = vand.u32 2147483648, %v2383_v23 }
 0x30d   : > { %vm2488_vm10 = vcmp.eq.f32.partialorder %v1088_v7, 8.507059e+37  ;;  %v1173_v44 = vadd.f32 %v1172_v14, %v1171_v32 }
 0x30e   : > { %v1067_v49 = vmul.f32 %v2403_v6, %v1066_v59  ;;  %v1091_v33 = vor.u32 1.1754944e-38, %v1090_v18 }
 0x310   : > { %v1068_v25 = vadd.f32 %v2403_v6, %v1067_v49 }
 0x311   : > { %v2423_v34 = vpop.eup %1637 }
 0x312   : > { %v2394_v10 = vpop.xlane.xlu2 %887  ;;  %v1080_v39 = vmul.f32 %v2423_v34, %v2383_v23  ;;  %v1072_v15 = vsel %vm1071_vm5, %v2403_v6, %v1068_v25  ;;  %vm1085_vm7 = vweird.f32 %v2423_v34 }
 0x313   : > { %1639 = vrcp.f32 %v2394_v10  ;;  %v1077_v6 = vsel %vm1074_vm6, %v1076_v61, %v1072_v15  ;;  %vm2496_vm12 = vmor %vm1084_vm8, %vm1085_vm7  ;;  %vm1099_vm13 = vweird.f32 %v2394_v10  ;;  %v1103_v50 = vand.u32 2147483647, %v2394_v10 }
 0x314   : > { %v1081_v21 = vsub.f32 1.0, %v1080_v39  ;;  %v1105_v43 = vand.u32 2147483648, %v2394_v10  ;;  %v1174_v56 = vsel %vm1154_vm9, %v1077_v6, 0.0 }
 0x315   : > { %vm1104_vm2 = vcmp.eq.f32.partialorder %v1103_v50, 8.507059e+37  ;;  %v1175_v20 = vadd.f32 %v1174_v56, %v1173_v44 }
 0x316   : > { %v1082_v27 = vmul.f32 %v2423_v34, %v1081_v21  ;;  %v1106_v59 = vor.u32 1.1754944e-38, %v1105_v43 }
 0x318   : > { %v1083_v16 = vadd.f32 %v2423_v34, %v1082_v27 }
 0x319   : > { %v2437_v3 = vpop.eup %1639 }
 0x31a   : > { %v2428_v30 = vpop.xlane.xlu1 %890  ;;  %v1095_v11 = vmul.f32 %v2437_v3, %v2394_v10  ;;  %vm1100_vm11 = vweird.f32 %v2437_v3  ;;  %v1087_v23 = vsel %vm2496_vm12, %v2423_v34, %v1083_v16 }
 0x31b   : > { %1641 = vrcp.f32 %v2428_v30  ;;  %vm2509_vm15 = vmor %vm1099_vm13, %vm1100_vm11  ;;  %vm1114_vm0 = vweird.f32 %v2428_v30  ;;  %v1120_v10 = vand.u32 2147483648, %v2428_v30  ;;  %v1118_v13 = vand.u32 2147483647, %v2428_v30 }
 0x31c   : > { %v1096_v51 = vsub.f32 1.0, %v1095_v11  ;;  %v1092_v54 = vsel %vm2488_vm10, %v1091_v33, %v1087_v23 }
 0x31d   : > { %v1121_v42 = vor.u32 1.1754944e-38, %v1120_v10  ;;  %vm1119_vm6 = vcmp.eq.f32.partialorder %v1118_v13, 8.507059e+37  ;;  %v1176_v12 = vsel %vm1154_vm9, %v1092_v54, 0.0 }
 0x31e   : > { %v1097_v31 = vmul.f32 %v2437_v3, %v1096_v51 }
 0x320   : > { %v1098_v19 = vadd.f32 %v2437_v3, %v1097_v31 }
 0x321   : > { %v2456_v63 = vpop.eup %1641 }
 0x322   : > { %v1110_v52 = vmul.f32 %v2456_v63, %v2428_v30  ;;  %v2468_v4 = vpop.xlane.xlu2 %893  ;;  %vm1115_vm14 = vweird.f32 %v2456_v63  ;;  %v1102_v34 = vsel %vm2509_vm15, %v2437_v3, %v1098_v19 }
 0x323   : > { %1643 = vrcp.f32 %v2468_v4  ;;  %vm2521_vm3 = vmor %vm1114_vm0, %vm1115_vm14  ;;  %v1135_v37 = vand.u32 2147483648, %v2468_v4  ;;  %vm1129_vm4 = vweird.f32 %v2468_v4  ;;  %v1133_v3 = vand.u32 2147483647, %v2468_v4 }
 0x324   : > { %v1111_v28 = vsub.f32 1.0, %v1110_v52  ;;  %v1107_v26 = vsel %vm1104_vm2, %v1106_v59, %v1102_v34  ;;  %v1177_v52 = vadd.f32 %v1176_v12, %v1175_v20 }
 0x325   : > { %v1136_v47 = vor.u32 1.1754944e-38, %v1135_v37  ;;  %vm1134_vm7 = vcmp.eq.f32.partialorder %v1133_v3, 8.507059e+37 }
 0x326   : > { %v1112_v17 = vmul.f32 %v2456_v63, %v1111_v28 }
 0x328   : > { %v1113_v35 = vadd.f32 %v2456_v63, %v1112_v17 }
 0x329   : > { %v1644_v55 = vpop.eup %1643 }
 0x32a   : > { %v1125_v24 = vmul.f32 %v1644_v55, %v2468_v4  ;;  %v897_v29 = vpop.xlane.xlu1 %896  ;;  %vm1130_vm1 = vweird.f32 %v1644_v55  ;;  %v1117_v30 = vsel %vm2521_vm3, %v2456_v63, %v1113_v35  ;;  %v1178_v63 = vsel %vm1154_vm9, %v1107_v26, 0.0 }
 0x32b   : > { %1645 = vrcp.f32 %v897_v29  ;;  %vm1131_vm5 = vmor %vm1129_vm4, %vm1130_vm1  ;;  %v1122_v49 = vsel %vm1119_vm6, %v1121_v42, %v1117_v30  ;;  %v1150_v38 = vand.u32 2147483648, %v897_v29  ;;  %v1148_v62 = vand.u32 2147483647, %v897_v29 }
 0x32c   : > { %v1126_v5 = vsub.f32 1.0, %v1125_v24  ;;  %v1180_v22 = vsel %vm1154_vm9, %v1122_v49, 0.0  ;;  %v1179_v1 = vadd.f32 %v1178_v63, %v1177_v52  ;;  %vm1144_vm10 = vweird.f32 %v897_v29 }
 0x32d   : > { %v1151_v48 = vor.u32 1.1754944e-38, %v1150_v38  ;;  %vm1149_vm12 = vcmp.eq.f32.partialorder %v1148_v62, 8.507059e+37 }
 0x32e   : > { %v1127_v60 = vmul.f32 %v1644_v55, %v1126_v5  ;;  %v1181_v25 = vadd.f32 %v1180_v22, %v1179_v1 }
 0x330   : > { %v1128_v39 = vadd.f32 %v1644_v55, %v1127_v60 }
 0x331   : > { %v1646_v41 = vpop.eup %1645 }
 0x332   : > { %v1140_v46 = vmul.f32 %v1646_v41, %v897_v29  ;;  %v1132_v11 = vsel %vm1131_vm5, %v1644_v55, %v1128_v39  ;;  %vm1145_vm8 = vweird.f32 %v1646_v41 }
 0x333   : > { %v1137_v57 = vsel %vm1134_vm7, %v1136_v47, %v1132_v11  ;;  %vm1146_vm11 = vmor %vm1144_vm10, %vm1145_vm8 }
 0x334   : > { %v1141_v21 = vsub.f32 1.0, %v1140_v46  ;;  %v1182_v4 = vsel %vm1154_vm9, %v1137_v57, 0.0 }
 0x335   : > { %v1183_v27 = vadd.f32 %v1182_v4, %v1181_v25 }
 0x336   : > { %v1142_v53 = vmul.f32 %v1646_v41, %v1141_v21 }
 0x338   : > { %v1143_v51 = vadd.f32 %v1646_v41, %v1142_v53 }
 0x33a   : > { %v1147_v8 = vsel %vm1146_vm11, %v1646_v41, %v1143_v51 }
 0x33b   : > { %v1152_v9 = vsel %vm1149_vm12, %v1151_v48, %v1147_v8 }
 0x33c   : > { %v1184_v28 = vsel %vm1154_vm9, %v1152_v9, 0.0 }
 0x33d   : > { %v1185_v45 = vadd.f32 %v1184_v28, %v1183_v27 }
 0x33f   : > { %1186 = vadd.xlane.f32.xlu2 %v1185_v45 }
 0x3b2   : > { %v1187_v7 = vpop.xlane.xlu2 %1186 }
 0x3b3   : > { %v1188_v0 = vrot.slane %v1187_v7, 4 }
 0x3b5   : > { %v1189_v31 = vadd.f32 %v1188_v0, %v1187_v7 }
 0x3b7   : > { %v1190_v32 = vrot.slane %v1189_v31, 2 }
 0x3b9   : > { %v1191_v15 = vadd.f32 %v1190_v32, %v1189_v31 }
 0x3bb   : > { %v1192_v61 = vrot.slane %v1191_v15, 1 }
 0x3bd   : > { %v1193_v16 = vadd.f32 %v1192_v61, %v1191_v15 }
 0x3bf   : > { %1399 = vpush %v1193_v16 }
 0x3f0   : > { %s1400_s12 = spop %1399 }
 0x3f1   : > { %s1195_s6 = smul.f32 0.00390625, %s1400_s12 }
 0x3f3   : > { %v1196_v17 = vstv %s1195_s6 }
 0x3f4   : > { %1197 = vst [vmem:[%s281_s27] sm:$0xff] %v1196_v17 }
 0x3f5   : > { %1764 = shalt.err (!%p1761_p4)
}
 0x3f6   : > { %1407 = dma.vmem_to_hbm [thread:$0]  (%p2011_p8), %s1214_s11, 128, %s1216_s28, %s1199_s7  }
 0x3f7 PF: > { %s2657_s19 = sld [smem:[#allocation13_spill]]  ;;  %p1424_p7 = scmp.ge.s32.totalorder %s1867_s22, 2 }
 0x3f9   : > { %p1420_p9 = pnand %p1424_p7, %p2017_p11 }
 0x3fb   : > { %p1421_p0 = pneg %p1420_p9 }
 0x3fd   : > { %s1227_s25 = sand.u32 1, %s2657_s19  }
 0x3fe   : > { %s1228_s29 = scalar_lea.sflag [#allocation4], %s1227_s25 }
 0x3ff   : > { %1822 = dma.done.wait (%p1421_p0), %s1228_s29, 128  }
 0x400   : > { %1824 = vsyncadd (%p1421_p0), %s1228_s29, 4294967168  ;;  %s22_s22 = sadd.s32 1, %s1867_s22   ;;  %s2659_s18 = smov %s2030_s15 }
 0x401   : > { %p19_p1 = scmp.ge.s32.totalorder %s22_s22, 6   ;;  %s2660_s24 = sld [smem:[#allocation17_spill]] }
 0x402   : > { %s2661_s27 = sld [smem:[#allocation19_spill]]  ;;  %s2662_s12 = smov %s1831_s13 }
 0x403   : > { %s2663_s13 = smov %s1835_s14  ;;  %s2664_s14 = smov %s2027_s30 }
 0x404   : > { %s2665_s15 = smov %s1843_s16  ;;  %s2666_s16 = smov %s1847_s17 }
 0x405   : > { %s2667_s17 = smov %s2659_s18  ;;  %s2668_s18 = smov %s1859_s20 }
 0x406   : > { %s2669_s19 = smov %s1863_s21  ;;  %21 = sbr.rel (!%p19_p1) target bundleno = 14 (0xe), region = 101 }
 0x407   : > { %s2670_s20 = smov %s2660_s24 }
 0x408   : > { %s2671_s21 = smov %s2661_s27 }
 0x40b   :  { %1234 = vsyncpa [#allocation3], 1 }
 0x40c   :  { %1236 = vsyncpa [#allocation3 + $0x1], 1 }
 0x40d   :  { %1237 = vsyncpa [#allocation6], 1 }
 0x40e   :  { %1239 = vsyncpa [#allocation6 + $0x1], 1 }
 0x40f   :  { %1240 = vsyncpa [#allocation4], 1 }
 0x410   :  { %1242 = vsyncpa [#allocation4 + $0x1], 1 }

</bundles_post_ra>
